<compile_context>
chip_gen: v7x
topology: tpu7x:2x2x1
jax: 0.10.0
libtpu: 0.0.40
codegen_flags: <defaults>
</compile_context>

<pallas_src>
import jax
import jax.numpy as jnp
from jax.experimental import pallas as pl

BN_EPS = 1e-5          # torch.nn.BatchNorm1d default eps
DIFFPOOL_EPS = 1e-15   # EPS of dense_diff_pool's entropy term

NUM_CLUSTERS = 3       # num_nodes in Net.__init__
HIDDEN = 64            # hidden_channels of both GNNs
LANE = 128             # TPU lane width: hidden/output channel dims are padded to this


def _full_spec(shape):
    nd = len(shape)
    return pl.BlockSpec(shape, lambda *_: (0,) * nd)


# ----------------------------- fused Pallas kernel -----------------------------

def _net_pool_kernel(x_ref, adj_ref, w1_ref, w23_ref, wl_ref, vec_ref,
                     s_ref, loss_ref):
    """gnn1_pool (3x DenseSAGEConv->ReLU->BN, ReLU(Linear)) + softmax + diff-pool losses."""
    B, N, _ = adj_ref.shape
    K = s_ref.shape[-1]
    BN = B * N

    adj = adj_ref[...]                                             # (B, N, N) f32
    # Degree normalisation folded into the adjacency ONCE, shared by all three layers.
    deg = jnp.maximum(jnp.sum(adj, axis=-1, keepdims=True), 1.0)   # clamp(min=1)
    adj_n = (adj * pl.reciprocal(deg, approx=True)).astype(jnp.bfloat16)

    x_bf = x_ref[...].astype(jnp.bfloat16)                         # (B, N, F_IN)

    # TODO(synk): mask is None in Net's call path; the mask branches of
    # DenseSAGEConv / dense_diff_pool are not implemented.
    def sage_bn_relu(h_bf, w_rel, w_root, b, g, bt):
        # DenseSAGEConv(normalize=False): lin_rel(mean-agg) + lin_root(x) + bias,
        # then ReLU, then BatchNorm1d over flattened (B*N, C) (training batch stats).
        cin = h_bf.shape[-1]
        agg = jnp.einsum('bij,bjc->bic', adj_n, h_bf,
                         preferred_element_type=jnp.float32)       # (B, N, cin) f32
        o = (jnp.dot(agg.reshape(BN, cin).astype(jnp.bfloat16), w_rel,
                     preferred_element_type=jnp.float32)
             + jnp.dot(h_bf.reshape(BN, cin), w_root,
                       preferred_element_type=jnp.float32)
             + b)                                                  # (BN, LANE) f32
        o = jnp.maximum(o, 0.0)                                    # ReLU
        mean = jnp.mean(o, axis=0, keepdims=True)                  # BN batch stats
        c = o - mean
        var = jnp.mean(c * c, axis=0, keepdims=True)               # single-pass BN
        o = c * jax.lax.rsqrt(var + BN_EPS) * g + bt               # padded lanes stay 0
        return o.astype(jnp.bfloat16)                              # (BN, LANE) bf16

    x1 = sage_bn_relu(x_bf, w1_ref[0], w1_ref[1],
                      vec_ref[0:1, :], vec_ref[1:2, :], vec_ref[2:3, :])
    x2 = sage_bn_relu(x1.reshape(B, N, LANE), w23_ref[0], w23_ref[1],
                      vec_ref[3:4, :], vec_ref[4:5, :], vec_ref[5:6, :])
    x3 = sage_bn_relu(x2.reshape(B, N, LANE), w23_ref[2], w23_ref[3],
                      vec_ref[6:7, :], vec_ref[7:8, :], vec_ref[8:9, :])

    # ReLU(Linear(cat[x1, x2, x3])) as three ref-indexed dots — no concat copy; the
    # lane-misaligned 131-row Linear weight was pre-scattered into 128-row blocks.
    s = (jnp.dot(x1, wl_ref[0], preferred_element_type=jnp.float32)
         + jnp.dot(x2, wl_ref[1], preferred_element_type=jnp.float32)
         + jnp.dot(x3, wl_ref[2], preferred_element_type=jnp.float32)
         + vec_ref[9:10, :K])                                      # (BN, K)
    s = jnp.maximum(s, 0.0)

    # softmax(s, dim=-1)
    e = jnp.exp(s - jnp.max(s, axis=-1, keepdims=True))
    s_soft = e * pl.reciprocal(jnp.sum(e, axis=-1, keepdims=True), approx=True)
    s3 = s_soft.reshape(B, N, K)
    s_ref[...] = s3

    # dense_diff_pool link loss: ||adj - S S^T||_F / numel(adj)
    sst = jnp.einsum('bik,bjk->bij', s3, s3, preferred_element_type=jnp.float32)
    d2 = ((adj - sst) * (adj - sst)).reshape(BN, N)
    sq = jnp.sum(jnp.sum(d2, axis=-1, keepdims=True), axis=0, keepdims=True)   # (1, 1)
    loss_ref[0:1, 0:1] = jnp.sqrt(sq) * (1.0 / float(B * N * N))

    # dense_diff_pool entropy loss: mean over (B, N) of -sum_k s * log(s + EPS)
    ent = jnp.sum(-s_soft * jnp.log(s_soft + DIFFPOOL_EPS), axis=-1, keepdims=True)
    loss_ref[0:1, 1:2] = jnp.sum(ent, axis=0, keepdims=True) * (1.0 / float(BN))


# ----------------------------- wrapper -----------------------------

@jax.jit
def net_forward(x, adj, pool_params):
    """Net.forward(x, adj, mask=None) -> (softmax(s, -1), link_loss, ent_loss).

    gnn1_embed is intentionally not computed: everything derived from it is
    discarded by Net.forward, so it never affects the returned values.
    """
    w1, w23, wl, vecs = pool_params
    B, N, _ = x.shape
    K = wl.shape[-1]
    args = (x, adj, w1, w23, wl, vecs)
    # NOTE: the whole problem (<1 MiB) fits in VMEM in a single grid step, so full
    # BlockSpecs are used.  When scaling B/N: tile adj over the neighbor axis and/or
    # grid over batch, sizing tiles for v7x's 64 MiB physical VMEM (32 MiB scoped
    # default) with double-buffering accounted for; the batch-stat BatchNorm and the
    # two loss reductions couple all B*N rows, so a batched grid needs two-pass BN
    # statistics and an "arbitrary" accumulator axis, not a plain "parallel" split.
    s_soft, losses = pl.pallas_call(
        _net_pool_kernel,
        out_shape=(jax.ShapeDtypeStruct((B, N, K), jnp.float32),
                   jax.ShapeDtypeStruct((1, 2), jnp.float32)),
        in_specs=[_full_spec(a.shape) for a in args],
        out_specs=[_full_spec((B, N, K)), _full_spec((1, 2))],
    )(*args)
    return s_soft, losses[0, 0], losses[0, 1]


# ----------------------------- deterministic params -----------------------------

def _init_linear(key, cin, cout, bias=True):
    kw, kb = jax.random.split(key)
    bound = 1.0 / (cin ** 0.5)
    w = jax.random.uniform(kw, (cin, cout), jnp.float32, -bound, bound)  # stored (Cin, Cout)
    b = jax.random.uniform(kb, (1, cout), jnp.float32, -bound, bound) if bias else None
    return w, b


def _pack_sage(key, cin, cout, cin_store):
    """DenseSAGEConv + BatchNorm1d params: (2, cin_store, LANE) weight stack
    [w_rel, w_root] and a (3, LANE) [bias, gamma, beta] slab (padded channels = 0)."""
    k1, k2 = jax.random.split(key)
    w_rel, _ = _init_linear(k1, cin, cout, bias=False)    # lin_rel: no bias
    w_root, b = _init_linear(k2, cin, cout, bias=True)    # lin_root: bias
    w = jnp.zeros((2, cin_store, LANE), jnp.float32)
    w = w.at[0, :cin, :cout].set(w_rel)
    w = w.at[1, :cin, :cout].set(w_root)
    vec = jnp.zeros((3, LANE), jnp.float32)
    vec = vec.at[0, :cout].set(b[0])     # conv bias
    vec = vec.at[1, :cout].set(1.0)      # BatchNorm1d gamma default (beta row stays 0)
    return w, vec


def init_pool_params(key, f_in, hidden, k):
    """gnn1_pool = GNN(f_in, hidden, k, lin=True), packed into 4 stacked slabs."""
    k1, k2, k3, k4 = jax.random.split(key, 4)
    w1, v1 = _pack_sage(k1, f_in, hidden, f_in)     # (2, f_in, LANE): no 16x K padding
    w2, v2 = _pack_sage(k2, hidden, hidden, LANE)
    w3, v3 = _pack_sage(k3, hidden, k, LANE)
    w23 = jnp.concatenate([w2, w3], axis=0)         # (4, LANE, LANE)

    # Final Linear (2*hidden + k -> k): scatter the misaligned 131-row weight into
    # three lane-aligned 128-row blocks so the kernel never materialises the concat.
    w_lin, b_lin = _init_linear(k4, 2 * hidden + k, k, bias=True)
    wl = jnp.zeros((3, LANE, k), jnp.float32)
    wl = wl.at[0, :hidden, :].set(w_lin[:hidden])
    wl = wl.at[1, :hidden, :].set(w_lin[hidden:2 * hidden])
    wl = wl.at[2, :k, :].set(w_lin[2 * hidden:])

    vecs = jnp.zeros((10, LANE), jnp.float32)       # rows: [b, g, bt] x 3 layers, lin bias
    vecs = vecs.at[0:3].set(v1).at[3:6].set(v2).at[6:9].set(v3)
    vecs = vecs.at[9, :k].set(b_lin[0])

    # Weights only feed the MXU -> store bf16 (halved DMA); vector params stay f32.
    return (w1.astype(jnp.bfloat16), w23.astype(jnp.bfloat16),
            wl.astype(jnp.bfloat16), vecs)


if __name__ == "__main__":
    key = jax.random.PRNGKey(0)
    B, N, F_IN = 2, 16, 8        # batch, num_nodes, dataset.num_node_attributes (synthetic)

    kx, ka, kp = jax.random.split(key, 3)
    x = jax.random.normal(kx, (B, N, F_IN), jnp.float32)
    a = (jax.random.uniform(ka, (B, N, N)) < 0.3).astype(jnp.float32)
    adj = jnp.maximum(a, jnp.swapaxes(a, 1, 2))   # symmetric dense 0/1 adjacency

    pool_params = init_pool_params(kp, F_IN, HIDDEN, NUM_CLUSTERS)
    # gnn1_embed (GNN(F_IN, 64, 64, lin=False)) is not instantiated or run: Net.forward
    # discards every value derived from it.

    s_soft, l1, e1 = net_forward(x, adj, pool_params)
    jax.block_until_ready((s_soft, l1, e1))
    assert s_soft.shape == (B, N, NUM_CLUSTERS)
    print("KERNEL_OK")
</pallas_src>

<mosaic_0001>
module attributes {stable_mosaic.version = 11 : i64} {
  func.func @_net_pool_kernel(%arg0: memref<2x16x8xf32, #tpu.memory_space<vmem>>, %arg1: memref<2x16x16xf32, #tpu.memory_space<vmem>>, %arg2: memref<2x8x128xbf16, #tpu.memory_space<vmem>>, %arg3: memref<4x128x128xbf16, #tpu.memory_space<vmem>>, %arg4: memref<3x128x3xbf16, #tpu.memory_space<vmem>>, %arg5: memref<10x128xf32, #tpu.memory_space<vmem>>, %arg6: memref<2x16x3xf32, #tpu.memory_space<vmem>>, %arg7: memref<1x2xf32, #tpu.memory_space<vmem>>) attributes {dimension_semantics = [], scalar_prefetch = 0 : i64, scratch_operands = 0 : i64, tpu.core_type = #tpu.core_type<tc>} {
    %c0 = arith.constant 0 : index
    %c0_0 = arith.constant 0 : index
    %c0_1 = arith.constant 0 : index
    %0 = vector.load %arg1[%c0, %c0_0, %c0_1] : memref<2x16x16xf32, #tpu.memory_space<vmem>>, vector<2x16x16xf32>
    %cst = arith.constant dense<0.000000e+00> : vector<2x16xf32>
    %1 = vector.multi_reduction <add>, %0, %cst [2] : vector<2x16x16xf32> to vector<2x16xf32>
    %2 = vector.shape_cast %1 : vector<2x16xf32> to vector<2x16x1xf32>
    %cst_2 = arith.constant 1.000000e+00 : f32
    %3 = vector.broadcast %cst_2 : f32 to vector<2x16x1xf32>
    %4 = arith.maximumf %2, %3 : vector<2x16x1xf32>
    %5 = tpu.reciprocal %4 {approx = true} : vector<2x16x1xf32> -> vector<2x16x1xf32>
    %6 = vector.broadcast %5 : vector<2x16x1xf32> to vector<2x16x16xf32>
    %7 = arith.mulf %0, %6 : vector<2x16x16xf32>
    %8 = arith.truncf %7 : vector<2x16x16xf32> to vector<2x16x16xbf16>
    %c0_3 = arith.constant 0 : index
    %c0_4 = arith.constant 0 : index
    %c0_5 = arith.constant 0 : index
    %9 = vector.load %arg0[%c0_3, %c0_4, %c0_5] : memref<2x16x8xf32, #tpu.memory_space<vmem>>, vector<2x16x8xf32>
    %10 = arith.truncf %9 : vector<2x16x8xf32> to vector<2x16x8xbf16>
    %c0_6 = arith.constant 0 : index
    %c0_7 = arith.constant 0 : index
    %c0_8 = arith.constant 0 : index
    %11 = vector.load %arg2[%c0_6, %c0_7, %c0_8] : memref<2x8x128xbf16, #tpu.memory_space<vmem>>, vector<1x8x128xbf16>
    %12 = vector.shape_cast %11 : vector<1x8x128xbf16> to vector<8x128xbf16>
    %c1 = arith.constant 1 : index
    %c0_9 = arith.constant 0 : index
    %c0_10 = arith.constant 0 : index
    %13 = vector.load %arg2[%c1, %c0_9, %c0_10] : memref<2x8x128xbf16, #tpu.memory_space<vmem>>, vector<1x8x128xbf16>
    %14 = vector.shape_cast %13 : vector<1x8x128xbf16> to vector<8x128xbf16>
    %c0_11 = arith.constant 0 : index
    %c0_12 = arith.constant 0 : index
    %15 = vector.load %arg5[%c0_11, %c0_12] : memref<10x128xf32, #tpu.memory_space<vmem>>, vector<1x128xf32>
    %c1_13 = arith.constant 1 : index
    %c0_14 = arith.constant 0 : index
    %16 = vector.load %arg5[%c1_13, %c0_14] : memref<10x128xf32, #tpu.memory_space<vmem>>, vector<1x128xf32>
    %c2 = arith.constant 2 : index
    %c0_15 = arith.constant 0 : index
    %17 = vector.load %arg5[%c2, %c0_15] : memref<10x128xf32, #tpu.memory_space<vmem>>, vector<1x128xf32>
    "tpu.trace_start"() <{level = 10 : i32, message = "bij,bjc->bic"}> : () -> ()
    %cst_16 = arith.constant dense<0.000000e+00> : vector<2x16x8xf32>
    %18 = tpu.matmul %8, %10, %cst_16 {dimension_numbers = #tpu.dot_dimension_numbers<[2], [1], [1], [2], [0, 0, 0, 1, 1, 2], [0], [0]>} : vector<2x16x16xbf16>, vector<2x16x8xbf16>, vector<2x16x8xf32> -> vector<2x16x8xf32>
    "tpu.trace_stop"() : () -> ()
    %19 = vector.shape_cast %18 : vector<2x16x8xf32> to vector<32x8xf32>
    %20 = arith.truncf %19 : vector<32x8xf32> to vector<32x8xbf16>
    %cst_17 = arith.constant dense<0.000000e+00> : vector<32x128xf32>
    %21 = tpu.matmul %20, %12, %cst_17 {dimension_numbers = #tpu.dot_dimension_numbers<[1], [0], [0], [1], [0, 0, 1, 1], [], []>} : vector<32x8xbf16>, vector<8x128xbf16>, vector<32x128xf32> -> vector<32x128xf32>
    %22 = vector.shape_cast %10 : vector<2x16x8xbf16> to vector<32x8xbf16>
    %cst_18 = arith.constant dense<0.000000e+00> : vector<32x128xf32>
    %23 = tpu.matmul %22, %14, %cst_18 {dimension_numbers = #tpu.dot_dimension_numbers<[1], [0], [0], [1], [0, 0, 1, 1], [], []>} : vector<32x8xbf16>, vector<8x128xbf16>, vector<32x128xf32> -> vector<32x128xf32>
    %24 = arith.addf %21, %23 : vector<32x128xf32>
    %25 = vector.broadcast %15 : vector<1x128xf32> to vector<32x128xf32>
    %26 = arith.addf %24, %25 : vector<32x128xf32>
    %cst_19 = arith.constant 0.000000e+00 : f32
    %27 = vector.broadcast %cst_19 : f32 to vector<32x128xf32>
    %28 = arith.maximumf %26, %27 : vector<32x128xf32>
    %cst_20 = arith.constant dense<0.000000e+00> : vector<128xf32>
    %29 = vector.multi_reduction <add>, %28, %cst_20 [0] : vector<32x128xf32> to vector<128xf32>
    %30 = vector.shape_cast %29 : vector<128xf32> to vector<1x128xf32>
    %cst_21 = arith.constant 3.200000e+01 : f32
    %31 = vector.broadcast %cst_21 : f32 to vector<1x128xf32>
    %32 = arith.divf %30, %31 : vector<1x128xf32>
    %33 = vector.broadcast %32 : vector<1x128xf32> to vector<32x128xf32>
    %34 = arith.subf %28, %33 : vector<32x128xf32>
    %35 = arith.mulf %34, %34 : vector<32x128xf32>
    %cst_22 = arith.constant dense<0.000000e+00> : vector<128xf32>
    %36 = vector.multi_reduction <add>, %35, %cst_22 [0] : vector<32x128xf32> to vector<128xf32>
    %37 = vector.shape_cast %36 : vector<128xf32> to vector<1x128xf32>
    %cst_23 = arith.constant 3.200000e+01 : f32
    %38 = vector.broadcast %cst_23 : f32 to vector<1x128xf32>
    %39 = arith.divf %37, %38 : vector<1x128xf32>
    %cst_24 = arith.constant 9.99999974E-6 : f32
    %40 = vector.broadcast %cst_24 : f32 to vector<1x128xf32>
    %41 = arith.addf %39, %40 : vector<1x128xf32>
    %42 = math.rsqrt %41 : vector<1x128xf32>
    %43 = vector.broadcast %42 : vector<1x128xf32> to vector<32x128xf32>
    %44 = arith.mulf %34, %43 : vector<32x128xf32>
    %45 = vector.broadcast %16 : vector<1x128xf32> to vector<32x128xf32>
    %46 = arith.mulf %44, %45 : vector<32x128xf32>
    %47 = vector.broadcast %17 : vector<1x128xf32> to vector<32x128xf32>
    %48 = arith.addf %46, %47 : vector<32x128xf32>
    %49 = arith.truncf %48 : vector<32x128xf32> to vector<32x128xbf16>
    %50 = vector.shape_cast %49 : vector<32x128xbf16> to vector<2x16x128xbf16>
    %c0_25 = arith.constant 0 : index
    %c0_26 = arith.constant 0 : index
    %c0_27 = arith.constant 0 : index
    %51 = vector.load %arg3[%c0_25, %c0_26, %c0_27] : memref<4x128x128xbf16, #tpu.memory_space<vmem>>, vector<1x128x128xbf16>
    %52 = vector.shape_cast %51 : vector<1x128x128xbf16> to vector<128x128xbf16>
    %c1_28 = arith.constant 1 : index
    %c0_29 = arith.constant 0 : index
    %c0_30 = arith.constant 0 : index
    %53 = vector.load %arg3[%c1_28, %c0_29, %c0_30] : memref<4x128x128xbf16, #tpu.memory_space<vmem>>, vector<1x128x128xbf16>
    %54 = vector.shape_cast %53 : vector<1x128x128xbf16> to vector<128x128xbf16>
    %c3 = arith.constant 3 : index
    %c0_31 = arith.constant 0 : index
    %55 = vector.load %arg5[%c3, %c0_31] : memref<10x128xf32, #tpu.memory_space<vmem>>, vector<1x128xf32>
    %c4 = arith.constant 4 : index
    %c0_32 = arith.constant 0 : index
    %56 = vector.load %arg5[%c4, %c0_32] : memref<10x128xf32, #tpu.memory_space<vmem>>, vector<1x128xf32>
    %c5 = arith.constant 5 : index
    %c0_33 = arith.constant 0 : index
    %57 = vector.load %arg5[%c5, %c0_33] : memref<10x128xf32, #tpu.memory_space<vmem>>, vector<1x128xf32>
    "tpu.trace_start"() <{level = 10 : i32, message = "bij,bjc->bic"}> : () -> ()
    %cst_34 = arith.constant dense<0.000000e+00> : vector<2x16x128xf32>
    %58 = tpu.matmul %8, %50, %cst_34 {dimension_numbers = #tpu.dot_dimension_numbers<[2], [1], [1], [2], [0, 0, 0, 1, 1, 2], [0], [0]>} : vector<2x16x16xbf16>, vector<2x16x128xbf16>, vector<2x16x128xf32> -> vector<2x16x128xf32>
    "tpu.trace_stop"() : () -> ()
    %59 = vector.shape_cast %58 : vector<2x16x128xf32> to vector<32x128xf32>
    %60 = arith.truncf %59 : vector<32x128xf32> to vector<32x128xbf16>
    %cst_35 = arith.constant dense<0.000000e+00> : vector<32x128xf32>
    %61 = tpu.matmul %60, %52, %cst_35 {dimension_numbers = #tpu.dot_dimension_numbers<[1], [0], [0], [1], [0, 0, 1, 1], [], []>} : vector<32x128xbf16>, vector<128x128xbf16>, vector<32x128xf32> -> vector<32x128xf32>
    %62 = vector.shape_cast %50 : vector<2x16x128xbf16> to vector<32x128xbf16>
    %cst_36 = arith.constant dense<0.000000e+00> : vector<32x128xf32>
    %63 = tpu.matmul %62, %54, %cst_36 {dimension_numbers = #tpu.dot_dimension_numbers<[1], [0], [0], [1], [0, 0, 1, 1], [], []>} : vector<32x128xbf16>, vector<128x128xbf16>, vector<32x128xf32> -> vector<32x128xf32>
    %64 = arith.addf %61, %63 : vector<32x128xf32>
    %65 = vector.broadcast %55 : vector<1x128xf32> to vector<32x128xf32>
    %66 = arith.addf %64, %65 : vector<32x128xf32>
    %cst_37 = arith.constant 0.000000e+00 : f32
    %67 = vector.broadcast %cst_37 : f32 to vector<32x128xf32>
    %68 = arith.maximumf %66, %67 : vector<32x128xf32>
    %cst_38 = arith.constant dense<0.000000e+00> : vector<128xf32>
    %69 = vector.multi_reduction <add>, %68, %cst_38 [0] : vector<32x128xf32> to vector<128xf32>
    %70 = vector.shape_cast %69 : vector<128xf32> to vector<1x128xf32>
    %cst_39 = arith.constant 3.200000e+01 : f32
    %71 = vector.broadcast %cst_39 : f32 to vector<1x128xf32>
    %72 = arith.divf %70, %71 : vector<1x128xf32>
    %73 = vector.broadcast %72 : vector<1x128xf32> to vector<32x128xf32>
    %74 = arith.subf %68, %73 : vector<32x128xf32>
    %75 = arith.mulf %74, %74 : vector<32x128xf32>
    %cst_40 = arith.constant dense<0.000000e+00> : vector<128xf32>
    %76 = vector.multi_reduction <add>, %75, %cst_40 [0] : vector<32x128xf32> to vector<128xf32>
    %77 = vector.shape_cast %76 : vector<128xf32> to vector<1x128xf32>
    %cst_41 = arith.constant 3.200000e+01 : f32
    %78 = vector.broadcast %cst_41 : f32 to vector<1x128xf32>
    %79 = arith.divf %77, %78 : vector<1x128xf32>
    %cst_42 = arith.constant 9.99999974E-6 : f32
    %80 = vector.broadcast %cst_42 : f32 to vector<1x128xf32>
    %81 = arith.addf %79, %80 : vector<1x128xf32>
    %82 = math.rsqrt %81 : vector<1x128xf32>
    %83 = vector.broadcast %82 : vector<1x128xf32> to vector<32x128xf32>
    %84 = arith.mulf %74, %83 : vector<32x128xf32>
    %85 = vector.broadcast %56 : vector<1x128xf32> to vector<32x128xf32>
    %86 = arith.mulf %84, %85 : vector<32x128xf32>
    %87 = vector.broadcast %57 : vector<1x128xf32> to vector<32x128xf32>
    %88 = arith.addf %86, %87 : vector<32x128xf32>
    %89 = arith.truncf %88 : vector<32x128xf32> to vector<32x128xbf16>
    %90 = vector.shape_cast %89 : vector<32x128xbf16> to vector<2x16x128xbf16>
    %c2_43 = arith.constant 2 : index
    %c0_44 = arith.constant 0 : index
    %c0_45 = arith.constant 0 : index
    %91 = vector.load %arg3[%c2_43, %c0_44, %c0_45] : memref<4x128x128xbf16, #tpu.memory_space<vmem>>, vector<1x128x128xbf16>
    %92 = vector.shape_cast %91 : vector<1x128x128xbf16> to vector<128x128xbf16>
    %c3_46 = arith.constant 3 : index
    %c0_47 = arith.constant 0 : index
    %c0_48 = arith.constant 0 : index
    %93 = vector.load %arg3[%c3_46, %c0_47, %c0_48] : memref<4x128x128xbf16, #tpu.memory_space<vmem>>, vector<1x128x128xbf16>
    %94 = vector.shape_cast %93 : vector<1x128x128xbf16> to vector<128x128xbf16>
    %c6 = arith.constant 6 : index
    %c0_49 = arith.constant 0 : index
    %95 = vector.load %arg5[%c6, %c0_49] : memref<10x128xf32, #tpu.memory_space<vmem>>, vector<1x128xf32>
    %c7 = arith.constant 7 : index
    %c0_50 = arith.constant 0 : index
    %96 = vector.load %arg5[%c7, %c0_50] : memref<10x128xf32, #tpu.memory_space<vmem>>, vector<1x128xf32>
    %c8 = arith.constant 8 : index
    %c0_51 = arith.constant 0 : index
    %97 = vector.load %arg5[%c8, %c0_51] : memref<10x128xf32, #tpu.memory_space<vmem>>, vector<1x128xf32>
    "tpu.trace_start"() <{level = 10 : i32, message = "bij,bjc->bic"}> : () -> ()
    %cst_52 = arith.constant dense<0.000000e+00> : vector<2x16x128xf32>
    %98 = tpu.matmul %8, %90, %cst_52 {dimension_numbers = #tpu.dot_dimension_numbers<[2], [1], [1], [2], [0, 0, 0, 1, 1, 2], [0], [0]>} : vector<2x16x16xbf16>, vector<2x16x128xbf16>, vector<2x16x128xf32> -> vector<2x16x128xf32>
    "tpu.trace_stop"() : () -> ()
    %99 = vector.shape_cast %98 : vector<2x16x128xf32> to vector<32x128xf32>
    %100 = arith.truncf %99 : vector<32x128xf32> to vector<32x128xbf16>
    %cst_53 = arith.constant dense<0.000000e+00> : vector<32x128xf32>
    %101 = tpu.matmul %100, %92, %cst_53 {dimension_numbers = #tpu.dot_dimension_numbers<[1], [0], [0], [1], [0, 0, 1, 1], [], []>} : vector<32x128xbf16>, vector<128x128xbf16>, vector<32x128xf32> -> vector<32x128xf32>
    %102 = vector.shape_cast %90 : vector<2x16x128xbf16> to vector<32x128xbf16>
    %cst_54 = arith.constant dense<0.000000e+00> : vector<32x128xf32>
    %103 = tpu.matmul %102, %94, %cst_54 {dimension_numbers = #tpu.dot_dimension_numbers<[1], [0], [0], [1], [0, 0, 1, 1], [], []>} : vector<32x128xbf16>, vector<128x128xbf16>, vector<32x128xf32> -> vector<32x128xf32>
    %104 = arith.addf %101, %103 : vector<32x128xf32>
    %105 = vector.broadcast %95 : vector<1x128xf32> to vector<32x128xf32>
    %106 = arith.addf %104, %105 : vector<32x128xf32>
    %cst_55 = arith.constant 0.000000e+00 : f32
    %107 = vector.broadcast %cst_55 : f32 to vector<32x128xf32>
    %108 = arith.maximumf %106, %107 : vector<32x128xf32>
    %cst_56 = arith.constant dense<0.000000e+00> : vector<128xf32>
    %109 = vector.multi_reduction <add>, %108, %cst_56 [0] : vector<32x128xf32> to vector<128xf32>
    %110 = vector.shape_cast %109 : vector<128xf32> to vector<1x128xf32>
    %cst_57 = arith.constant 3.200000e+01 : f32
    %111 = vector.broadcast %cst_57 : f32 to vector<1x128xf32>
    %112 = arith.divf %110, %111 : vector<1x128xf32>
    %113 = vector.broadcast %112 : vector<1x128xf32> to vector<32x128xf32>
    %114 = arith.subf %108, %113 : vector<32x128xf32>
    %115 = arith.mulf %114, %114 : vector<32x128xf32>
    %cst_58 = arith.constant dense<0.000000e+00> : vector<128xf32>
    %116 = vector.multi_reduction <add>, %115, %cst_58 [0] : vector<32x128xf32> to vector<128xf32>
    %117 = vector.shape_cast %116 : vector<128xf32> to vector<1x128xf32>
    %cst_59 = arith.constant 3.200000e+01 : f32
    %118 = vector.broadcast %cst_59 : f32 to vector<1x128xf32>
    %119 = arith.divf %117, %118 : vector<1x128xf32>
    %cst_60 = arith.constant 9.99999974E-6 : f32
    %120 = vector.broadcast %cst_60 : f32 to vector<1x128xf32>
    %121 = arith.addf %119, %120 : vector<1x128xf32>
    %122 = math.rsqrt %121 : vector<1x128xf32>
    %123 = vector.broadcast %122 : vector<1x128xf32> to vector<32x128xf32>
    %124 = arith.mulf %114, %123 : vector<32x128xf32>
    %125 = vector.broadcast %96 : vector<1x128xf32> to vector<32x128xf32>
    %126 = arith.mulf %124, %125 : vector<32x128xf32>
    %127 = vector.broadcast %97 : vector<1x128xf32> to vector<32x128xf32>
    %128 = arith.addf %126, %127 : vector<32x128xf32>
    %129 = arith.truncf %128 : vector<32x128xf32> to vector<32x128xbf16>
    %c0_61 = arith.constant 0 : index
    %c0_62 = arith.constant 0 : index
    %c0_63 = arith.constant 0 : index
    %130 = vector.load %arg4[%c0_61, %c0_62, %c0_63] : memref<3x128x3xbf16, #tpu.memory_space<vmem>>, vector<1x128x3xbf16>
    %131 = vector.shape_cast %130 : vector<1x128x3xbf16> to vector<128x3xbf16>
    %cst_64 = arith.constant dense<0.000000e+00> : vector<32x3xf32>
    %132 = tpu.matmul %49, %131, %cst_64 {dimension_numbers = #tpu.dot_dimension_numbers<[1], [0], [0], [1], [0, 0, 1, 1], [], []>} : vector<32x128xbf16>, vector<128x3xbf16>, vector<32x3xf32> -> vector<32x3xf32>
    %c1_65 = arith.constant 1 : index
    %c0_66 = arith.constant 0 : index
    %c0_67 = arith.constant 0 : index
    %133 = vector.load %arg4[%c1_65, %c0_66, %c0_67] : memref<3x128x3xbf16, #tpu.memory_space<vmem>>, vector<1x128x3xbf16>
    %134 = vector.shape_cast %133 : vector<1x128x3xbf16> to vector<128x3xbf16>
    %cst_68 = arith.constant dense<0.000000e+00> : vector<32x3xf32>
    %135 = tpu.matmul %89, %134, %cst_68 {dimension_numbers = #tpu.dot_dimension_numbers<[1], [0], [0], [1], [0, 0, 1, 1], [], []>} : vector<32x128xbf16>, vector<128x3xbf16>, vector<32x3xf32> -> vector<32x3xf32>
    %136 = arith.addf %132, %135 : vector<32x3xf32>
    %c2_69 = arith.constant 2 : index
    %c0_70 = arith.constant 0 : index
    %c0_71 = arith.constant 0 : index
    %137 = vector.load %arg4[%c2_69, %c0_70, %c0_71] : memref<3x128x3xbf16, #tpu.memory_space<vmem>>, vector<1x128x3xbf16>
    %138 = vector.shape_cast %137 : vector<1x128x3xbf16> to vector<128x3xbf16>
    %cst_72 = arith.constant dense<0.000000e+00> : vector<32x3xf32>
    %139 = tpu.matmul %129, %138, %cst_72 {dimension_numbers = #tpu.dot_dimension_numbers<[1], [0], [0], [1], [0, 0, 1, 1], [], []>} : vector<32x128xbf16>, vector<128x3xbf16>, vector<32x3xf32> -> vector<32x3xf32>
    %140 = arith.addf %136, %139 : vector<32x3xf32>
    %c9 = arith.constant 9 : index
    %c0_73 = arith.constant 0 : index
    %141 = vector.load %arg5[%c9, %c0_73] : memref<10x128xf32, #tpu.memory_space<vmem>>, vector<1x3xf32>
    %142 = vector.broadcast %141 : vector<1x3xf32> to vector<32x3xf32>
    %143 = arith.addf %140, %142 : vector<32x3xf32>
    %cst_74 = arith.constant 0.000000e+00 : f32
    %144 = vector.broadcast %cst_74 : f32 to vector<32x3xf32>
    %145 = arith.maximumf %143, %144 : vector<32x3xf32>
    %cst_75 = arith.constant dense<0xFF800000> : vector<32xf32>
    %146 = vector.multi_reduction <maximumf>, %145, %cst_75 [1] : vector<32x3xf32> to vector<32xf32>
    %147 = vector.shape_cast %146 : vector<32xf32> to vector<32x1xf32>
    %148 = vector.broadcast %147 : vector<32x1xf32> to vector<32x3xf32>
    %149 = arith.subf %145, %148 : vector<32x3xf32>
    %150 = math.exp %149 : vector<32x3xf32>
    %cst_76 = arith.constant dense<0.000000e+00> : vector<32xf32>
    %151 = vector.multi_reduction <add>, %150, %cst_76 [1] : vector<32x3xf32> to vector<32xf32>
    %152 = vector.shape_cast %151 : vector<32xf32> to vector<32x1xf32>
    %153 = tpu.reciprocal %152 {approx = true} : vector<32x1xf32> -> vector<32x1xf32>
    %154 = vector.broadcast %153 : vector<32x1xf32> to vector<32x3xf32>
    %155 = arith.mulf %150, %154 : vector<32x3xf32>
    %156 = vector.shape_cast %155 : vector<32x3xf32> to vector<2x16x3xf32>
    %c0_77 = arith.constant 0 : index
    %c0_78 = arith.constant 0 : index
    %c0_79 = arith.constant 0 : index
    %157 = vector.load %arg6[%c0_77, %c0_78, %c0_79] : memref<2x16x3xf32, #tpu.memory_space<vmem>>, vector<2x16x3xf32>
    tpu.vector_store %arg6[%c0_77, %c0_78, %c0_79], %156 {strides = array<i32>} : memref<2x16x3xf32, #tpu.memory_space<vmem>>, vector<2x16x3xf32>,
    "tpu.trace_start"() <{level = 10 : i32, message = "bik,bjk->bij"}> : () -> ()
    %cst_80 = arith.constant dense<0.000000e+00> : vector<2x16x16xf32>
    %158 = tpu.matmul %156, %156, %cst_80 {dimension_numbers = #tpu.dot_dimension_numbers<[2], [2], [1], [1], [0, 0, 0, 1, 1, 1], [0], [0]>} : vector<2x16x3xf32>, vector<2x16x3xf32>, vector<2x16x16xf32> -> vector<2x16x16xf32>
    "tpu.trace_stop"() : () -> ()
    %159 = arith.subf %0, %158 : vector<2x16x16xf32>
    %160 = arith.subf %0, %158 : vector<2x16x16xf32>
    %161 = arith.mulf %159, %160 : vector<2x16x16xf32>
    %162 = vector.shape_cast %161 : vector<2x16x16xf32> to vector<32x16xf32>
    %cst_81 = arith.constant dense<0.000000e+00> : vector<32xf32>
    %163 = vector.multi_reduction <add>, %162, %cst_81 [1] : vector<32x16xf32> to vector<32xf32>
    %164 = vector.shape_cast %163 : vector<32xf32> to vector<32x1xf32>
    %cst_82 = arith.constant dense<0.000000e+00> : vector<1xf32>
    %165 = vector.multi_reduction <add>, %164, %cst_82 [0] : vector<32x1xf32> to vector<1xf32>
    %166 = vector.shape_cast %165 : vector<1xf32> to vector<1x1xf32>
    %167 = math.sqrt %166 : vector<1x1xf32>
    %cst_83 = arith.constant 0.001953125 : f32
    %168 = vector.broadcast %cst_83 : f32 to vector<1x1xf32>
    %169 = arith.mulf %167, %168 : vector<1x1xf32>
    %c0_84 = arith.constant 0 : index
    %c0_85 = arith.constant 0 : index
    %170 = vector.load %arg7[%c0_84, %c0_85] : memref<1x2xf32, #tpu.memory_space<vmem>>, vector<1x1xf32>
    tpu.vector_store %arg7[%c0_84, %c0_85], %169 {strides = array<i32>} : memref<1x2xf32, #tpu.memory_space<vmem>>, vector<1x1xf32>,
    %cst_86 = arith.constant 0.000000e+00 : f32
    %171 = vector.broadcast %cst_86 : f32 to vector<32x3xf32>
    %172 = arith.subf %171, %155 : vector<32x3xf32>
    %cst_87 = arith.constant 1.000000e-15 : f32
    %173 = vector.broadcast %cst_87 : f32 to vector<32x3xf32>
    %174 = arith.addf %155, %173 : vector<32x3xf32>
    %175 = math.log %174 : vector<32x3xf32>
    %176 = arith.mulf %172, %175 : vector<32x3xf32>
    %cst_88 = arith.constant dense<0.000000e+00> : vector<32xf32>
    %177 = vector.multi_reduction <add>, %176, %cst_88 [1] : vector<32x3xf32> to vector<32xf32>
    %178 = vector.shape_cast %177 : vector<32xf32> to vector<32x1xf32>
    %cst_89 = arith.constant dense<0.000000e+00> : vector<1xf32>
    %179 = vector.multi_reduction <add>, %178, %cst_89 [0] : vector<32x1xf32> to vector<1xf32>
    %180 = vector.shape_cast %179 : vector<1xf32> to vector<1x1xf32>
    %cst_90 = arith.constant 3.125000e-02 : f32
    %181 = vector.broadcast %cst_90 : f32 to vector<1x1xf32>
    %182 = arith.mulf %180, %181 : vector<1x1xf32>
    %c0_91 = arith.constant 0 : index
    %c1_92 = arith.constant 1 : index
    %183 = vector.load %arg7[%c0_91, %c1_92] : memref<1x2xf32, #tpu.memory_space<vmem>>, vector<1x1xf32>
    tpu.vector_store %arg7[%c0_91, %c1_92], %182 {strides = array<i32>} : memref<1x2xf32, #tpu.memory_space<vmem>>, vector<1x1xf32>,
    return
  }
}

</mosaic_0001>

<bundles_post_ra>
// kernel: net_forward.1
= control target key start
LH: loop header
LB: loop body
LE: loop exit
PB: predicated region body
PF: predicated region fallthrough
CT: control target
= control target key end

     0   :  { %13 = vsyncpa [#allocation3], 0  ;;  %s2860_s0 = inlined_call_operand.vmem [shape: f32[2,16,8], index: 0, kind: input, shape index: {}]   ;;  %s2861_s1 = inlined_call_operand.hbm [shape: f32[2,16,16], index: 1, kind: input, shape index: {}]   ;;  %s2862_s2 = inlined_call_operand.hbm [shape: bf16[2,8,128], index: 2, kind: input, shape index: {}]   ;;  %s2863_s3 = inlined_call_operand.vmem [shape: bf16[4,128,128], index: 3, kind: input, shape index: {}]   ;;  %s2864_s4 = inlined_call_operand.vmem [shape: bf16[3,128,3], index: 4, kind: input, shape index: {}]   ;;  %s2865_s5 = inlined_call_operand.hbm [shape: f32[10,128], index: 5, kind: input, shape index: {}]   ;;  %s2866_s6 = inlined_call_operand.vmem [shape: f32[2,16,3], index: 6, kind: output, shape index: {0}]   ;;  %s2867_s7 = inlined_call_operand.vmem [shape: f32[1,2], index: 7, kind: output, shape index: {1}]  }
   0x1   :  { %14 = vsyncpa [#allocation5], 0  ;;  %s2477_s24 = smov [#allocation4]   ;;  %s2407_s28 = scalar_lea.hbm %s2862_s2, 128 }
   0x2   :  { %s34_s25 = sshll.u32 %s2477_s24, 4  ;;  %p2408_p0 = scmp.ne.s32.totalorder %s2862_s2, %s2407_s28  ;;  %s35_s25 = int_to_ptr.vmem [resolvable:$true] %s34_s25 }
   0x3   :  { %p2411_p1 = scmp.lt.u32.totalorder %s2407_s28, %s2862_s2 }
   0x5   :  { %p2413_p2 = pnand %p2411_p1, %p2408_p0 }
   0x7   :  { %2416 = shalt.err (!%p2413_p2)
}
   0x8   :  { %s2417_s10 = scalar_lea.vmem %s35_s25, 128  ;;  %p2422_p4 = scmp.lt.s32.totalorder %s35_s25, %s35_s25 }
   0x9   :  { %p2418_p3 = scmp.ne.s32.totalorder %s35_s25, %s2417_s10  ;;  %p2423_p5 = scmp.lt.s32.totalorder %s2417_s10, %s2417_s10 }
   0xb   :  { %p2424_p6 = por %p2423_p5, %p2422_p4 }
   0xd   :  { %p2425_p7 = pnand %p2424_p6, %p2418_p3 }
   0xf   :  { %2428 = shalt.err (!%p2425_p7)
}
  0x10   :  { %s2478_s11 = smov 64   ;;  %s2479_s12 = smov 4  }
  0x11   :  { %40 = dma.hbm_to_vmem [thread:$0]  %s2862_s2, 128, %s35_s25, [#allocation5], %s2478_s11, %s2478_s11, %s2479_s12  }
  0x12   :  { %s2480_s15 = smov [#allocation2]   ;;  %s2429_s19 = scalar_lea.hbm %s2861_s1, 512 }
  0x13   :  { %s22_s16 = sshll.u32 %s2480_s15, 4  ;;  %p2430_p8 = scmp.ne.s32.totalorder %s2861_s1, %s2429_s19  ;;  %s23_s16 = int_to_ptr.vmem [resolvable:$true] %s22_s16 }
  0x14   :  { %p2433_p9 = scmp.lt.u32.totalorder %s2429_s19, %s2861_s1 }
  0x16   :  { %p2435_p10 = pnand %p2433_p9, %p2430_p8 }
  0x18   :  { %2438 = shalt.err (!%p2435_p10)
}
  0x19   :  { %s2439_s24 = scalar_lea.vmem %s23_s16, 512  ;;  %p2444_p12 = scmp.lt.s32.totalorder %s23_s16, %s23_s16 }
  0x1a   :  { %p2440_p11 = scmp.ne.s32.totalorder %s23_s16, %s2439_s24  ;;  %p2445_p13 = scmp.lt.s32.totalorder %s2439_s24, %s2439_s24 }
  0x1c   :  { %p2446_p0 = por %p2445_p13, %p2444_p12 }
  0x1e   :  { %p2447_p1 = pnand %p2446_p0, %p2440_p11 }
  0x20   :  { %2450 = shalt.err (!%p2447_p1)
}
  0x21   :  { %s2481_s2 = smov 128   ;;  %s2482_s25 = smov 8  }
  0x22   :  { %28 = dma.hbm_to_vmem [thread:$0]  %s2861_s1, 512, %s23_s16, [#allocation3], %s2481_s2, %s2481_s2, %s2482_s25  }
  0x23   :  { %s2483_s28 = smov [#allocation6]   ;;  %s2451_s9 = scalar_lea.hbm %s2865_s5, 256 }
  0x24   :  { %s50_s29 = sshll.u32 %s2483_s28, 4  ;;  %p2452_p2 = scmp.ne.s32.totalorder %s2865_s5, %s2451_s9  ;;  %s51_s29 = int_to_ptr.vmem [resolvable:$true] %s50_s29 }
  0x25   :  { %p2455_p3 = scmp.lt.u32.totalorder %s2451_s9, %s2865_s5 }
  0x27   :  { %p2457_p4 = pnand %p2455_p3, %p2452_p2 }
  0x29   :  { %2460 = shalt.err (!%p2457_p4)
}
  0x2a   :  { %s2461_s14 = scalar_lea.vmem %s51_s29, 256  ;;  %p2466_p6 = scmp.lt.s32.totalorder %s51_s29, %s51_s29 }
  0x2b   :  { %p2462_p5 = scmp.ne.s32.totalorder %s51_s29, %s2461_s14  ;;  %p2467_p7 = scmp.lt.s32.totalorder %s2461_s14, %s2461_s14 }
  0x2d   :  { %p2468_p8 = por %p2467_p7, %p2466_p6 }
  0x2f   :  { %p2469_p9 = pnand %p2468_p8, %p2462_p5 }
  0x31   :  { %2472 = shalt.err (!%p2469_p9)
}
  0x32   :  { %56 = dma.hbm_to_vmem [thread:$0]  %s2865_s5, 256, %s51_s29, [#allocation5], %s2481_s2, %s2481_s2, %s2482_s25  }
  0x33   :  { %2473 = dma.done.wait [#allocation3], 512  }
  0x34   :  { %2474 = vsyncadd [#allocation3], 4294966784 }
  0x35   :  { %2475 = dma.done.wait [#allocation5], 384  }
  0x36   :  { %2476 = vsyncadd [#allocation5], 4294966912  ;;  %vm71_vm0 = vcmask 130048   ;;  %v69_v0 = vld [vmem:[#allocation2 + $0x10] sm:$0xff]  ;;  %v67_v1 = vld [vmem:[#allocation2] sm:$0xff]  ;;  %v2484_v11 = vmov 0.0  }
  0x37   :  { %v70_v2 = vld [vmem:[#allocation2 + $0x18] sm:$0xff]  ;;  %v78_v3 = vsel %vm71_vm0, %v69_v0, 0.0  ;;  %v72_v4 = vsel %vm71_vm0, %v67_v1, 0.0  ;;  %v68_v5 = vld [vmem:[#allocation2 + $0x8] sm:$0xff]  ;;  %v98_v8 = vld [vmem:[%s2860_s0] sm:$0xff]  ;;  %2062 = vmatprep.subr.bf16.mxu0 %v2484_v11  ;;  %2068 = vmatprep.subr.bf16.mxu1 %v2484_v11  ;;  %vm2485_vm1 = vmmov 0  }
  0x38   :  { %79 = vadd.xlane.f32.xlu1 %v78_v3  ;;  %73 = vadd.xlane.f32.xlu0 %v72_v4  ;;  %v81_v6 = vsel %vm71_vm0, %v70_v2, 0.0  ;;  %v75_v7 = vsel %vm71_vm0, %v68_v5, 0.0  ;;  %v99_v9 = vld [vmem:[%s2860_s0 + $0x8] sm:$0xff]  ;;  %v100_v10 = vld [vmem:[%s2860_s0 + $0x10] sm:$0xff]  ;;  %v101_v13 = vld [vmem:[%s2860_s0 + $0x18] sm:$0xff]  ;;  %vm207_vm2 = vcmask 1043456  }
  0x39   :  { %v102_v12 = vpack.c.bf16 %v99_v9, %v98_v8  ;;  %v103_v14 = vpack.c.bf16 %v101_v13, %v100_v10  ;;  %2064 = vmatprep.mubr.msk.bf16.mxu0 %vm2485_vm1, %v2484_v11  ;;  %2070 = vmatprep.mubr.msk.bf16.mxu1 %vm2485_vm1, %v2484_v11  ;;  %v106_v15 = vld [vmem:[#allocation4 + $0x4] sm:$0xf]  ;;  %vm200_vm3 = vcmask 64512   ;;  %v104_v35 = vld [vmem:[#allocation4] sm:$0xf]  ;;  %v2316_v48 = vld [vmem:[%s2863_s3 + $0x8] sm:$0xff]  }
  0x3a   :  { %v209_v34 = vsel %vm207_vm2, %v106_v15, 0  ;;  %v267_v36 = vsel %vm207_vm2, %v104_v35, 0  ;;  %v2315_v47 = vld [vmem:[%s2863_s3] sm:$0xff]   ;;  %v2317_v49 = vld [vmem:[%s2863_s3 + $0x10] sm:$0xff]   ;;  %v2318_v50 = vld [vmem:[%s2863_s3 + $0x18] sm:$0xff]   ;;  %vm1498_vm4 = vcmask 23552  }
  0x3b   :  { %2063 = vmatpush3.bf16.msra.mxu0 %v102_v12  ;;  %2069 = vmatpush3.bf16.msra.mxu1 %v103_v14  ;;  %v1808_v51 = vld [vmem:[#allocation6] ss:$0 sm:$0xff]  ;;  %v2319_v53 = vld [vmem:[%s2863_s3 + $0x20] sm:$0xff]   ;;  %vm2265_vm5 = vmpackc.low %vm1498_vm4, %vm1498_vm4  ;;  %vm1746_vm8 = vcmask 0   ;;  %vm1790_vm9 = vcmask 8200  }
  0x3c   :  { %82 = vadd.xlane.f32.xlu1 %v81_v6  ;;  %76 = vadd.xlane.f32.xlu0 %v75_v7 }
  0x3d   :  { %2086 = vmatprep.subr.bf16.mxu1 %v2484_v11  ;;  %2296 = vmatprep.subr.msk.bf16.mxu0 %vm207_vm2, %v106_v15 }
  0xc5   :  { %v80_v16 = vpop.xlane.xlu1 %79  ;;  %v74_v17 = vpop.xlane.xlu0 %73 }
  0xc6   :  { %v86_v18 = vmax.f32 %v80_v16, 1.0  ;;  %v84_v19 = vmax.f32 %v74_v17, 1.0 }
  0xc8   :  { %2363 = vrcp.f32 %v86_v18 }
  0xc9   :  { %v83_v20 = vpop.xlane.xlu1 %82  ;;  %v77_v21 = vpop.xlane.xlu0 %76  ;;  %2365 = vrcp.f32 %v84_v19 }
  0xca   :  { %v87_v22 = vmax.f32 %v83_v20, 1.0  ;;  %v85_v23 = vmax.f32 %v77_v21, 1.0 }
  0xcc   :  { %2367 = vrcp.f32 %v87_v22 }
  0xcd   :  { %2369 = vrcp.f32 %v85_v23 }
  0xd2   :  { %v2364_v24 = vpop.eup %2363 }
  0xd3   :  { %v2366_v25 = vpop.eup %2365  ;;  %v94_v28 = vmul.f32 %v2364_v24, %v69_v0 }
  0xd4   :  { %v92_v30 = vmul.f32 %v2366_v25, %v67_v1 }
  0xd6   :  { %v2368_v26 = vpop.eup %2367 }
  0xd7   :  { %v2370_v27 = vpop.eup %2369  ;;  %v95_v29 = vmul.f32 %v2368_v26, %v70_v2 }
  0xd8   :  { %v93_v31 = vmul.f32 %v2370_v27, %v68_v5 }
  0xd9   :  { %v2586_v32 = vpack.c.bf16 %v95_v29, %v94_v28 }
  0xda   :  { %v2588_v33 = vpack.c.bf16 %v93_v31, %v92_v30 }
  0xdb   :  { %2071 = vmatmul.mubr.msk.bf16.vlgmr.msra.gmra.mrb[0].mxu1 %vm71_vm0, %v2586_v32 }
  0xdc   :  { %2065 = vmatmul.mubr.msk.bf16.vlgmr.msra.gmra.mrb[0].mxu0 %vm71_vm0, %v2588_v33  ;;  %2088 = vmatprep.mubr.msk.bf16.mxu1 %vm2485_vm1, %v2484_v11 }
  0xdd   :  { %2075 = vmatpush3.bf16.msra.mxu0 %v209_v34  ;;  %2076 = vmatprep.mubr.msk.bf16.mxu0 %vm200_vm3, %v102_v12  ;;  %v1809_v34 = vld [vmem:[#allocation6 + $0x1] ss:$0 sm:$0xff] }
  0xde   :  { %2297 = vmatprep.subr.msk.bf16.mxu0 %vm207_vm2, %v104_v35 }
  0xe4   :  { %2077 = vmatmul.mubr.msk.bf16.vlgmr.msra.gmra.mrb[4].mxu0 %vm200_vm3, %v103_v14 }
  0xe5   :  { %2081 = vmatpush3.bf16.msra.mxu0 %v267_v36 }
  0xe6   :  { %2118 = vmatprep.subr.bf16.mxu0 %v2315_v47 }
 0x1ae   :  { %v191_v37 = vpop.f32.mrb[0].mxu1 }
 0x1af   :  { %v147_v38 = vpop.f32.mrb[0].mxu0  ;;  %v2072_v39 = vpop.f32.mrb[1].mxu1 }
 0x1b0   :  { %v2066_v40 = vpop.f32.mrb[1].mxu0  ;;  %v194_v41 = vpop.f32.mrb[2].mxu1  ;;  %v1810_v39 = vld [vmem:[#allocation6 + $0x2] ss:$0 sm:$0xff] }
 0x1b1   :  { %v150_v42 = vpop.f32.mrb[2].mxu0  ;;  %v199_v43 = vpack.c.bf16 %v194_v41, %v191_v37  ;;  %v2073_v44 = vpop.f32.mrb[3].mxu1 }
 0x1b2   :  { %v198_v45 = vpack.c.bf16 %v150_v42, %v147_v38  ;;  %v2067_v46 = vpop.f32.mrb[3].mxu0 }
 0x1b4   :  { %2082 = vmatprep.mubr.msk.bf16.mxu0 %vm200_vm3, %v198_v45 }
 0x1b5   :  { %2083 = vmatmul.mubr.msk.bf16.vlgmr.msra.gmra.mrb[4].mxu0 %vm200_vm3, %v199_v43 }
 0x1b6   :  { %2119 = vmatpush3.bf16.msra.mxu0 %v2315_v47 }
 0x1b7   :  { %2120 = vmatprep.subr.bf16.mxu0 %v2316_v48 }
 0x1ba   :  { %2121 = vmatpush3.bf16.msra.mxu0 %v2316_v48 }
 0x1bb   :  { %2122 = vmatprep.subr.bf16.mxu0 %v2317_v49 }
 0x1be   :  { %2123 = vmatpush3.bf16.msra.mxu0 %v2317_v49 }
 0x1bf   :  { %2124 = vmatprep.subr.bf16.mxu0 %v2318_v50 }
 0x1c2   :  { %2125 = vmatpush3.bf16.msra.mxu0 %v2318_v50  ;;  %v2307_v50 = vld [vmem:[%s2863_s3 + $0x40] sm:$0xff]  }
 0x1c3   :  { %2126 = vmatprep.subr.bf16.mxu0 %v2319_v53 }
 0x1c6   :  { %2127 = vmatpush3.bf16.msra.mxu0 %v2319_v53  ;;  %v2310_v53 = vld [vmem:[%s2863_s3 + $0x58] sm:$0xff]  }
 0x288   :  { %v2084_v52 = vpop.f32.mrb[4].mxu0 }
 0x289   :  { %v303_v54 = vpop.f32.mrb[5].mxu0  ;;  %v324_v58 = vadd.f32 %v2084_v52, %v1808_v51  ;;  %v2309_v52 = vld [vmem:[%s2863_s3 + $0x50] sm:$0xff]  }
 0x28a   :  { %v322_v55 = vadd.f32 %v1808_v51, %v303_v54  ;;  %v2085_v56 = vpop.f32.mrb[6].mxu0  ;;  %v2311_v54 = vld [vmem:[%s2863_s3 + $0x60] sm:$0xff]  }
 0x28b   :  { %v306_v57 = vpop.f32.mrb[7].mxu0  ;;  %v325_v61 = vadd.f32 %v2085_v56, %v1808_v51  ;;  %v328_v63 = vmax.f32 %v324_v58, 0.0  ;;  %v2313_v56 = vld [vmem:[%s2863_s3 + $0x70] sm:$0xff]   ;;  %v2320_v58 = vld [vmem:[%s2863_s3 + $0x28] sm:$0xff]  }
 0x28c   :  { %v323_v59 = vadd.f32 %v1808_v51, %v306_v57  ;;  %v326_v60 = vmax.f32 %v322_v55, 0.0  ;;  %v2308_v51 = vld [vmem:[%s2863_s3 + $0x48] sm:$0xff]   ;;  %v2314_v57 = vld [vmem:[%s2863_s3 + $0x78] sm:$0xff]   ;;  %2128 = vmatprep.subr.bf16.mxu0 %v2320_v58 }
 0x28d   :  { %v329_v1 = vmax.f32 %v325_v61, 0.0  ;;  %v2312_v55 = vld [vmem:[%s2863_s3 + $0x68] sm:$0xff]   ;;  %2129 = vmatpush3.bf16.msra.mxu0 %v2320_v58 }
 0x28e   :  { %v327_v62 = vmax.f32 %v323_v59, 0.0  ;;  %v2321_v59 = vld [vmem:[%s2863_s3 + $0x30] sm:$0xff]  }
 0x28f   :  { %2130 = vmatprep.subr.bf16.mxu0 %v2321_v59 }
 0x290   :  { %v330_v0 = vadd.f32 %v327_v62, %v326_v60 }
 0x291   :  { %2131 = vmatpush3.bf16.msra.mxu0 %v2321_v59 }
 0x292   :  { %v331_v2 = vadd.f32 %v330_v0, %v328_v63 }
 0x294   :  { %v332_v3 = vadd.f32 %v331_v2, %v329_v1 }
 0x296   :  { %v333_v4 = vrot.slane %v332_v3, 4 }
 0x298   :  { %v334_v5 = vadd.f32 %v333_v4, %v332_v3 }
 0x29a   :  { %v335_v6 = vrot.slane %v334_v5, 2 }
 0x29c   :  { %v336_v7 = vadd.f32 %v335_v6, %v334_v5 }
 0x29e   :  { %v337_v8 = vrot.slane %v336_v7, 1 }
 0x2a0   :  { %v338_v9 = vadd.f32 %v337_v8, %v336_v7 }
 0x2a2   :  { %v340_v10 = vmul.f32 0.03125, %v338_v9 }
 0x2a4   :  { %v341_v12 = vsub.f32 %v326_v60, %v340_v10  ;;  %v342_v13 = vsub.f32 %v327_v62, %v340_v10  ;;  %v343_v14 = vsub.f32 %v328_v63, %v340_v10  ;;  %v344_v15 = vsub.f32 %v329_v1, %v340_v10  ;;  %v2322_v60 = vld [vmem:[%s2863_s3 + $0x38] sm:$0xff]  }
 0x2a5   :  { %2132 = vmatprep.subr.bf16.mxu0 %v2322_v60 }
 0x2a6   :  { %v345_v16 = vmul.f32 %v341_v12, %v341_v12  ;;  %v346_v17 = vmul.f32 %v342_v13, %v342_v13  ;;  %v347_v18 = vmul.f32 %v343_v14, %v343_v14  ;;  %v348_v20 = vmul.f32 %v344_v15, %v344_v15  ;;  %2133 = vmatpush3.bf16.msra.mxu0 %v2322_v60 }
 0x2a8   :  { %v349_v19 = vadd.f32 %v346_v17, %v345_v16  ;;  %v2327_v16 = vld [vmem:[%s2864_s4 + $0x60] sm:$0xff]   ;;  %v2328_v17 = vld [vmem:[%s2864_s4 + $0x68] sm:$0xff]  }
 0x2aa   :  { %v350_v21 = vadd.f32 %v349_v19, %v347_v18  ;;  %v2329_v18 = vld [vmem:[%s2864_s4 + $0x70] sm:$0xff]   ;;  %v2330_v19 = vld [vmem:[%s2864_s4 + $0x78] sm:$0xff]  }
 0x2ac   :  { %v351_v22 = vadd.f32 %v350_v21, %v348_v20  ;;  %v2696_v20 = vld [vmem:[%s2864_s4] sm:$0xff]  }
 0x2ae   :  { %v352_v23 = vrot.slane %v351_v22, 4 }
 0x2b0   :  { %v353_v24 = vadd.f32 %v352_v23, %v351_v22  ;;  %v1845_v22 = vld [vmem:[#allocation6 + $0x3] ss:$0 sm:$0xff] }
 0x2b2   :  { %v354_v25 = vrot.slane %v353_v24, 2 }
 0x2b4   :  { %v355_v26 = vadd.f32 %v354_v25, %v353_v24 }
 0x2b6   :  { %v356_v27 = vrot.slane %v355_v26, 1 }
 0x2b8   :  { %v357_v28 = vadd.f32 %v356_v27, %v355_v26 }
 0x2ba   :  { %v358_v29 = vmul.f32 0.03125, %v357_v28 }
 0x2bc   :  { %v359_v30 = vadd.f32 1e-05, %v358_v29 }
 0x2be   :  { %2371 = vrsqrt.f32 %v359_v30 }
 0x2c8   :  { %v2372_v31 = vpop.eup %2371 }
 0x2c9   :  { %v361_v35 = vmul.f32 %v2372_v31, %v341_v12  ;;  %v362_v36 = vmul.f32 %v2372_v31, %v342_v13  ;;  %v363_v37 = vmul.f32 %v2372_v31, %v343_v14  ;;  %v364_v38 = vmul.f32 %v2372_v31, %v344_v15  ;;  %v2323_v12 = vld [vmem:[%s2864_s4 + $0x40] sm:$0xff]   ;;  %v2324_v13 = vld [vmem:[%s2864_s4 + $0x48] sm:$0xff]   ;;  %v2325_v14 = vld [vmem:[%s2864_s4 + $0x50] sm:$0xff]  }
 0x2ca   :  { %2190 = vmatprep.subr.bf16.mxu0 %v2323_v12  ;;  %v2326_v15 = vld [vmem:[%s2864_s4 + $0x58] sm:$0xff]  }
 0x2cb   :  { %v370_v40 = vmul.f32 %v1809_v34, %v362_v36  ;;  %v369_v41 = vmul.f32 %v1809_v34, %v361_v35  ;;  %v371_v42 = vmul.f32 %v1809_v34, %v363_v37  ;;  %v372_v43 = vmul.f32 %v1809_v34, %v364_v38 }
 0x2cd   :  { %v378_v44 = vadd.f32 %v1810_v39, %v370_v40  ;;  %v377_v45 = vadd.f32 %v1810_v39, %v369_v41  ;;  %v379_v46 = vadd.f32 %v1810_v39, %v371_v42  ;;  %v380_v47 = vadd.f32 %v1810_v39, %v372_v43 }
 0x2cf   :  { %v2618_v48 = vpack.c.bf16 %v378_v44, %v377_v45  ;;  %v2620_v49 = vpack.c.bf16 %v380_v47, %v379_v46 }
 0x2d1   :  { %2087 = vmatpush3.bf16.msra.mxu1 %v2618_v48 }
 0x2d2   :  { %2092 = vmatprep.subr.bf16.mxu1 %v2484_v11 }
 0x2d4   :  { %2089 = vmatmul.mubr.msk.bf16.vlgmr.msra.gmra.mrb[4].mxu1 %vm71_vm0, %v2588_v33 }
 0x2d5   :  { %2093 = vmatpush3.bf16.msra.mxu1 %v2620_v49  ;;  %2094 = vmatprep.mubr.msk.bf16.mxu1 %vm2485_vm1, %v2484_v11 }
 0x2d6   :  { %2098 = vmatprep.subr.bf16.mxu1 %v2307_v50 }
 0x2dc   :  { %2095 = vmatmul.mubr.msk.bf16.vlgmr.msra.gmra.mrb[8].mxu1 %vm71_vm0, %v2586_v32 }
 0x2dd   :  { %2099 = vmatpush3.bf16.msra.mxu1 %v2307_v50  ;;  %2114 = vmatprep.mubr.bf16.mxu1 %v2618_v48 }
 0x2de   :  { %2100 = vmatprep.subr.bf16.mxu1 %v2308_v51 }
 0x2e1   :  { %2101 = vmatpush3.bf16.msra.mxu1 %v2308_v51 }
 0x2e2   :  { %2102 = vmatprep.subr.bf16.mxu1 %v2309_v52 }
 0x2e5   :  { %2103 = vmatpush3.bf16.msra.mxu1 %v2309_v52 }
 0x2e6   :  { %2104 = vmatprep.subr.bf16.mxu1 %v2310_v53 }
 0x2e9   :  { %2105 = vmatpush3.bf16.msra.mxu1 %v2310_v53 }
 0x2ea   :  { %2106 = vmatprep.subr.bf16.mxu1 %v2311_v54 }
 0x2ed   :  { %2107 = vmatpush3.bf16.msra.mxu1 %v2311_v54 }
 0x2ee   :  { %2108 = vmatprep.subr.bf16.mxu1 %v2312_v55 }
 0x2f1   :  { %2109 = vmatpush3.bf16.msra.mxu1 %v2312_v55 }
 0x2f2   :  { %2110 = vmatprep.subr.bf16.mxu1 %v2313_v56 }
 0x2f5   :  { %2111 = vmatpush3.bf16.msra.mxu1 %v2313_v56 }
 0x2f6   :  { %2112 = vmatprep.subr.bf16.mxu1 %v2314_v57 }
 0x2f9   :  { %2113 = vmatpush3.bf16.msra.mxu1 %v2314_v57 }
 0x2fa   :  { %2138 = vmatprep.subr.bf16.mxu1 %v2484_v11 }
 0x2fc   :  { %2115 = vmatmul.mubr.bf16.vlgmr.msra.gmra.mrb[12].mxu1 %v2620_v49 }
 0x2fd   :  { %2140 = vmatprep.mubr.msk.bf16.mxu1 %vm2485_vm1, %v2484_v11 }
 0x3a7   :  { %v453_v61 = vpop.f32.mrb[4].mxu1 }
 0x3a8   :  { %v2090_v62 = vpop.f32.mrb[5].mxu1 }
 0x3a9   :  { %v456_v63 = vpop.f32.mrb[6].mxu1 }
 0x3aa   :  { %v501_v0 = vpack.c.bf16 %v456_v63, %v453_v61  ;;  %v2091_v1 = vpop.f32.mrb[7].mxu1 }
 0x3ac   :  { %2134 = vmatprep.mubr.bf16.mxu0 %v501_v0 }
 0x3af   :  { %v494_v2 = vpop.f32.mrb[8].mxu1 }
 0x3b0   :  { %v2096_v3 = vpop.f32.mrb[9].mxu1 }
 0x3b1   :  { %v497_v4 = vpop.f32.mrb[10].mxu1 }
 0x3b2   :  { %v502_v5 = vpack.c.bf16 %v497_v4, %v494_v2  ;;  %v2097_v6 = vpop.f32.mrb[11].mxu1 }
 0x3b4   :  { %2135 = vmatmul.mubr.bf16.vlgmr.msra.gmra.mrb[8].mxu0 %v502_v5 }
 0x3b5   :  { %2191 = vmatpush3.bf16.msra.mxu0 %v2323_v12 }
 0x3b6   :  { %2192 = vmatprep.subr.bf16.mxu0 %v2324_v13 }
 0x3b9   :  { %2193 = vmatpush3.bf16.msra.mxu0 %v2324_v13 }
 0x3ba   :  { %2194 = vmatprep.subr.bf16.mxu0 %v2325_v14 }
 0x3bd   :  { %2195 = vmatpush3.bf16.msra.mxu0 %v2325_v14  ;;  %v1847_v14 = vld [vmem:[#allocation6 + $0x5] ss:$0 sm:$0xff] }
 0x3be   :  { %2196 = vmatprep.subr.bf16.mxu0 %v2326_v15 }
 0x3c1   :  { %2197 = vmatpush3.bf16.msra.mxu0 %v2326_v15 }
 0x3c2   :  { %2198 = vmatprep.subr.bf16.mxu0 %v2327_v16 }
 0x3c5   :  { %2199 = vmatpush3.bf16.msra.mxu0 %v2327_v16 }
 0x3c6   :  { %2200 = vmatprep.subr.bf16.mxu0 %v2328_v17 }
 0x3c9   :  { %2201 = vmatpush3.bf16.msra.mxu0 %v2328_v17 }
 0x3ca   :  { %2202 = vmatprep.subr.bf16.mxu0 %v2329_v18 }
 0x3cd   :  { %2203 = vmatpush3.bf16.msra.mxu0 %v2329_v18 }
 0x3ce   :  { %2204 = vmatprep.subr.bf16.mxu0 %v2330_v19 }
 0x3cf   :  { %v2116_v7 = vpop.f32.mrb[12].mxu1 }
 0x3d0   :  { %v585_v8 = vpop.f32.mrb[13].mxu1 }
 0x3d1   :  { %v2117_v9 = vpop.f32.mrb[14].mxu1  ;;  %2205 = vmatpush3.bf16.msra.mxu0 %v2330_v19 }
 0x3d2   :  { %v588_v10 = vpop.f32.mrb[15].mxu1  ;;  %2210 = vmatprep.subr.bf16.mxu0 %v2696_v20 }
 0x487   :  { %v2136_v21 = vpop.f32.mrb[8].mxu0 }
 0x488   :  { %v691_v23 = vadd.f32 %v2136_v21, %v2116_v7  ;;  %v682_v24 = vpop.f32.mrb[9].mxu0 }
 0x489   :  { %v683_v25 = vadd.f32 %v682_v24, %v585_v8  ;;  %v2137_v26 = vpop.f32.mrb[10].mxu0  ;;  %v1846_v8 = vld [vmem:[#allocation6 + $0x4] ss:$0 sm:$0xff] }
 0x48a   :  { %v694_v27 = vadd.f32 %v2137_v26, %v2117_v9  ;;  %v685_v28 = vpop.f32.mrb[11].mxu0  ;;  %v703_v31 = vadd.f32 %v1845_v22, %v691_v23  ;;  %v2332_v26 = vld [vmem:[%s2864_s4 + $0x8] sm:$0xff]  }
 0x48b   :  { %v701_v29 = vadd.f32 %v1845_v22, %v683_v25  ;;  %v686_v30 = vadd.f32 %v685_v28, %v588_v10  ;;  %v2333_v28 = vld [vmem:[%s2864_s4 + $0x10] sm:$0xff]  }
 0x48c   :  { %v704_v36 = vadd.f32 %v1845_v22, %v694_v27  ;;  %v707_v38 = vmax.f32 %v703_v31, 0.0  ;;  %v2334_v27 = vld [vmem:[%s2863_s3 + $0xc0] sm:$0xff]  }
 0x48d   :  { %v702_v34 = vadd.f32 %v1845_v22, %v686_v30  ;;  %v705_v35 = vmax.f32 %v701_v29, 0.0  ;;  %v2339_v29 = vld [vmem:[%s2864_s4 + $0x28] sm:$0xff]   ;;  %v2341_v30 = vld [vmem:[%s2864_s4 + $0x30] sm:$0xff]   ;;  %v2342_v31 = vld [vmem:[%s2863_s3 + $0xe0] sm:$0xff]  }
 0x48e   :  { %v708_v40 = vmax.f32 %v704_v36, 0.0  ;;  %v2345_v36 = vld [vmem:[%s2863_s3 + $0xf0] sm:$0xff]  }
 0x48f   :  { %v706_v37 = vmax.f32 %v702_v34, 0.0  ;;  %v2343_v34 = vld [vmem:[%s2864_s4 + $0x38] sm:$0xff]  }
 0x491   :  { %v709_v39 = vadd.f32 %v706_v37, %v705_v35 }
 0x493   :  { %v710_v41 = vadd.f32 %v709_v39, %v707_v38  ;;  %v2348_v39 = vld [vmem:[%s2863_s3 + $0x88] sm:$0xff]  }
 0x495   :  { %v711_v42 = vadd.f32 %v710_v41, %v708_v40  ;;  %v2351_v41 = vld [vmem:[%s2863_s3 + $0xa0] sm:$0xff]  }
 0x497   :  { %v712_v43 = vrot.slane %v711_v42, 4 }
 0x499   :  { %v713_v44 = vadd.f32 %v712_v43, %v711_v42  ;;  %v2352_v42 = vld [vmem:[%s2863_s3 + $0xa8] sm:$0xff]   ;;  %v2353_v43 = vld [vmem:[%s2863_s3 + $0xb0] sm:$0xff]  }
 0x49b   :  { %v714_v45 = vrot.slane %v713_v44, 2 }
 0x49d   :  { %v715_v46 = vadd.f32 %v714_v45, %v713_v44  ;;  %v2354_v44 = vld [vmem:[%s2863_s3 + $0xb8] sm:$0xff]  }
 0x49f   :  { %v716_v47 = vrot.slane %v715_v46, 1 }
 0x4a1   :  { %v717_v50 = vadd.f32 %v716_v47, %v715_v46 }
 0x4a3   :  { %v718_v51 = vmul.f32 0.03125, %v717_v50 }
 0x4a5   :  { %v719_v52 = vsub.f32 %v705_v35, %v718_v51  ;;  %v720_v53 = vsub.f32 %v706_v37, %v718_v51  ;;  %v721_v54 = vsub.f32 %v707_v38, %v718_v51  ;;  %v722_v55 = vsub.f32 %v708_v40, %v718_v51  ;;  %v2344_v35 = vld [vmem:[%s2863_s3 + $0xe8] sm:$0xff]   ;;  %v2346_v37 = vld [vmem:[%s2863_s3 + $0xf8] sm:$0xff]   ;;  %v2347_v38 = vld [vmem:[%s2863_s3 + $0x80] sm:$0xff]  }
 0x4a6   :  { %v2350_v40 = vld [vmem:[%s2863_s3 + $0x98] sm:$0xff]  }
 0x4a7   :  { %v723_v56 = vmul.f32 %v719_v52, %v719_v52  ;;  %v724_v57 = vmul.f32 %v720_v53, %v720_v53  ;;  %v725_v58 = vmul.f32 %v721_v54, %v721_v54  ;;  %v726_v60 = vmul.f32 %v722_v55, %v722_v55 }
 0x4a9   :  { %v727_v59 = vadd.f32 %v724_v57, %v723_v56  ;;  %v2355_v57 = vld [vmem:[%s2864_s4 + $0x80] sm:$0xff]  }
 0x4ab   :  { %v728_v61 = vadd.f32 %v727_v59, %v725_v58  ;;  %v2356_v58 = vld [vmem:[%s2864_s4 + $0x88] sm:$0xff]   ;;  %v2357_v59 = vld [vmem:[%s2864_s4 + $0x90] sm:$0xff]  }
 0x4ad   :  { %v729_v62 = vadd.f32 %v728_v61, %v726_v60  ;;  %v2358_v60 = vld [vmem:[%s2864_s4 + $0x98] sm:$0xff]   ;;  %v2359_v61 = vld [vmem:[%s2864_s4 + $0xa0] sm:$0xff]  }
 0x4af   :  { %v730_v63 = vrot.slane %v729_v62, 4 }
 0x4b1   :  { %v731_v0 = vadd.f32 %v730_v63, %v729_v62  ;;  %v2360_v62 = vld [vmem:[%s2864_s4 + $0xa8] sm:$0xff]   ;;  %v2361_v63 = vld [vmem:[%s2864_s4 + $0xb0] sm:$0xff]  }
 0x4b3   :  { %v732_v1 = vrot.slane %v731_v0, 2 }
 0x4b5   :  { %v733_v2 = vadd.f32 %v732_v1, %v731_v0  ;;  %v2362_v0 = vld [vmem:[%s2864_s4 + $0xb8] sm:$0xff]   ;;  %v1898_v1 = vld [vmem:[#allocation6 + $0x6] ss:$0 sm:$0xff] }
 0x4b7   :  { %v734_v3 = vrot.slane %v733_v2, 1 }
 0x4b9   :  { %v735_v4 = vadd.f32 %v734_v3, %v733_v2 }
 0x4bb   :  { %v736_v5 = vmul.f32 0.03125, %v735_v4 }
 0x4bd   :  { %v737_v6 = vadd.f32 1e-05, %v736_v5 }
 0x4bf   :  { %2373 = vrsqrt.f32 %v737_v6 }
 0x4c9   :  { %v2374_v7 = vpop.eup %2373 }
 0x4ca   :  { %v740_v9 = vmul.f32 %v2374_v7, %v720_v53  ;;  %v739_v10 = vmul.f32 %v2374_v7, %v719_v52  ;;  %v741_v12 = vmul.f32 %v2374_v7, %v721_v54  ;;  %v742_v13 = vmul.f32 %v2374_v7, %v722_v55 }
 0x4cc   :  { %v748_v15 = vmul.f32 %v1846_v8, %v740_v9  ;;  %v747_v16 = vmul.f32 %v1846_v8, %v739_v10  ;;  %v749_v17 = vmul.f32 %v1846_v8, %v741_v12  ;;  %v750_v18 = vmul.f32 %v1846_v8, %v742_v13 }
 0x4ce   :  { %v755_v19 = vadd.f32 %v1847_v14, %v747_v16  ;;  %v756_v21 = vadd.f32 %v1847_v14, %v748_v15  ;;  %v757_v22 = vadd.f32 %v1847_v14, %v749_v17  ;;  %v758_v23 = vadd.f32 %v1847_v14, %v750_v18 }
 0x4d0   :  { %v759_v24 = vpack.c.bf16 %v756_v21, %v755_v19  ;;  %v760_v25 = vpack.c.bf16 %v758_v23, %v757_v22 }
 0x4d2   :  { %2139 = vmatpush3.bf16.msra.mxu1 %v759_v24  ;;  %2206 = vmatprep.mubr.bf16.mxu0 %v759_v24 }
 0x4d3   :  { %2207 = vmatmul.mubr.bf16.vlgmr.msra.gmra.mrb[12].mxu0 %v760_v25  ;;  %2144 = vmatprep.subr.bf16.mxu1 %v2484_v11 }
 0x4d4   :  { %2211 = vmatpush3.bf16.msra.mxu0 %v2696_v20  ;;  %2226 = vmatprep.mubr.bf16.mxu0 %v2618_v48  ;;  %v2335_v20 = vld [vmem:[%s2864_s4 + $0x18] sm:$0xff]   ;;  %v2338_v48 = vld [vmem:[%s2863_s3 + $0xd0] sm:$0xff]  }
 0x4d5   :  { %2141 = vmatmul.mubr.msk.bf16.vlgmr.msra.gmra.mrb[16].mxu1 %vm71_vm0, %v2588_v33  ;;  %2212 = vmatprep.subr.bf16.mxu0 %v2332_v26  ;;  %v2336_v33 = vld [vmem:[%s2863_s3 + $0xc8] sm:$0xff]  }
 0x4d6   :  { %2145 = vmatpush3.bf16.msra.mxu1 %v760_v25  ;;  %2146 = vmatprep.mubr.msk.bf16.mxu1 %vm2485_vm1, %v2484_v11  ;;  %v2337_v11 = vld [vmem:[%s2864_s4 + $0x20] sm:$0xff]  }
 0x4d7   :  { %2150 = vmatprep.subr.bf16.mxu1 %v2334_v27 }
 0x4d8   :  { %2213 = vmatpush3.bf16.msra.mxu0 %v2332_v26 }
 0x4d9   :  { %2214 = vmatprep.subr.bf16.mxu0 %v2333_v28 }
 0x4dc   :  { %2215 = vmatpush3.bf16.msra.mxu0 %v2333_v28 }
 0x4dd   :  { %2147 = vmatmul.mubr.msk.bf16.vlgmr.msra.gmra.mrb[20].mxu1 %vm71_vm0, %v2586_v32  ;;  %2216 = vmatprep.subr.bf16.mxu0 %v2335_v20  ;;  %v2340_v32 = vld [vmem:[%s2863_s3 + $0xd8] sm:$0xff]  }
 0x4de   :  { %2151 = vmatpush3.bf16.msra.mxu1 %v2334_v27  ;;  %2166 = vmatprep.mubr.bf16.mxu1 %v759_v24 }
 0x4df   :  { %2152 = vmatprep.subr.bf16.mxu1 %v2336_v33 }
 0x4e0   :  { %2217 = vmatpush3.bf16.msra.mxu0 %v2335_v20 }
 0x4e1   :  { %2218 = vmatprep.subr.bf16.mxu0 %v2337_v11 }
 0x4e2   :  { %2153 = vmatpush3.bf16.msra.mxu1 %v2336_v33 }
 0x4e3   :  { %2154 = vmatprep.subr.bf16.mxu1 %v2338_v48 }
 0x4e4   :  { %2219 = vmatpush3.bf16.msra.mxu0 %v2337_v11 }
 0x4e5   :  { %2220 = vmatprep.subr.bf16.mxu0 %v2339_v29 }
 0x4e6   :  { %2155 = vmatpush3.bf16.msra.mxu1 %v2338_v48 }
 0x4e7   :  { %2156 = vmatprep.subr.bf16.mxu1 %v2340_v32 }
 0x4e8   :  { %2221 = vmatpush3.bf16.msra.mxu0 %v2339_v29 }
 0x4e9   :  { %2222 = vmatprep.subr.bf16.mxu0 %v2341_v30 }
 0x4ea   :  { %2157 = vmatpush3.bf16.msra.mxu1 %v2340_v32 }
 0x4eb   :  { %2158 = vmatprep.subr.bf16.mxu1 %v2342_v31 }
 0x4ec   :  { %2223 = vmatpush3.bf16.msra.mxu0 %v2341_v30 }
 0x4ed   :  { %2224 = vmatprep.subr.bf16.mxu0 %v2343_v34 }
 0x4ee   :  { %2159 = vmatpush3.bf16.msra.mxu1 %v2342_v31 }
 0x4ef   :  { %2160 = vmatprep.subr.bf16.mxu1 %v2344_v35 }
 0x4f0   :  { %2225 = vmatpush3.bf16.msra.mxu0 %v2343_v34 }
 0x4f1   :  { %2230 = vmatprep.subr.bf16.mxu0 %v2355_v57 }
 0x4f2   :  { %2161 = vmatpush3.bf16.msra.mxu1 %v2344_v35 }
 0x4f3   :  { %2227 = vmatmul.mubr.bf16.vlgmr.msra.gmra.mrb[12].mxu0 %v2620_v49  ;;  %2162 = vmatprep.subr.bf16.mxu1 %v2345_v36  ;;  %v2349_v49 = vld [vmem:[%s2863_s3 + $0x90] sm:$0xff]  }
 0x4f4   :  { %2231 = vmatpush3.bf16.msra.mxu0 %v2355_v57 }
 0x4f5   :  { %2232 = vmatprep.subr.bf16.mxu0 %v2356_v58 }
 0x4f6   :  { %2163 = vmatpush3.bf16.msra.mxu1 %v2345_v36 }
 0x4f7   :  { %2164 = vmatprep.subr.bf16.mxu1 %v2346_v37 }
 0x4f8   :  { %2233 = vmatpush3.bf16.msra.mxu0 %v2356_v58 }
 0x4f9   :  { %2234 = vmatprep.subr.bf16.mxu0 %v2357_v59 }
 0x4fa   :  { %2165 = vmatpush3.bf16.msra.mxu1 %v2346_v37 }
 0x4fb   :  { %2170 = vmatprep.subr.bf16.mxu1 %v2347_v38 }
 0x4fc   :  { %2235 = vmatpush3.bf16.msra.mxu0 %v2357_v59 }
 0x4fd   :  { %2167 = vmatmul.mubr.bf16.vlgmr.msra.gmra.mrb[24].mxu1 %v760_v25  ;;  %2236 = vmatprep.subr.bf16.mxu0 %v2358_v60 }
 0x4fe   :  { %2171 = vmatpush3.bf16.msra.mxu1 %v2347_v38 }
 0x4ff   :  { %2172 = vmatprep.subr.bf16.mxu1 %v2348_v39 }
 0x500   :  { %2237 = vmatpush3.bf16.msra.mxu0 %v2358_v60  ;;  %v1957_v60 = vld [vmem:[#allocation6 + $0x9] ss:$0 sm:$0xff] }
 0x501   :  { %2238 = vmatprep.subr.bf16.mxu0 %v2359_v61 }
 0x502   :  { %2173 = vmatpush3.bf16.msra.mxu1 %v2348_v39 }
 0x503   :  { %2174 = vmatprep.subr.bf16.mxu1 %v2349_v49 }
 0x504   :  { %2239 = vmatpush3.bf16.msra.mxu0 %v2359_v61 }
 0x505   :  { %2240 = vmatprep.subr.bf16.mxu0 %v2360_v62 }
 0x506   :  { %2175 = vmatpush3.bf16.msra.mxu1 %v2349_v49 }
 0x507   :  { %2176 = vmatprep.subr.bf16.mxu1 %v2350_v40 }
 0x508   :  { %2241 = vmatpush3.bf16.msra.mxu0 %v2360_v62 }
 0x509   :  { %2242 = vmatprep.subr.bf16.mxu0 %v2361_v63 }
 0x50a   :  { %2177 = vmatpush3.bf16.msra.mxu1 %v2350_v40 }
 0x50b   :  { %2178 = vmatprep.subr.bf16.mxu1 %v2351_v41 }
 0x50c   :  { %2243 = vmatpush3.bf16.msra.mxu0 %v2361_v63 }
 0x50d   :  { %2244 = vmatprep.subr.bf16.mxu0 %v2362_v0 }
 0x50e   :  { %2179 = vmatpush3.bf16.msra.mxu1 %v2351_v41 }
 0x50f   :  { %2180 = vmatprep.subr.bf16.mxu1 %v2352_v42 }
 0x510   :  { %2245 = vmatpush3.bf16.msra.mxu0 %v2362_v0 }
 0x512   :  { %2181 = vmatpush3.bf16.msra.mxu1 %v2352_v42  ;;  %v1899_v42 = vld [vmem:[#allocation6 + $0x7] ss:$0 sm:$0xff] }
 0x513   :  { %2182 = vmatprep.subr.bf16.mxu1 %v2353_v43 }
 0x516   :  { %2183 = vmatpush3.bf16.msra.mxu1 %v2353_v43 }
 0x517   :  { %2184 = vmatprep.subr.bf16.mxu1 %v2354_v44 }
 0x51a   :  { %2185 = vmatpush3.bf16.msra.mxu1 %v2354_v44 }
 0x5a8   :  { %v832_v45 = vpop.f32.mrb[16].mxu1 }
 0x5a9   :  { %v2142_v46 = vpop.f32.mrb[17].mxu1 }
 0x5aa   :  { %v835_v47 = vpop.f32.mrb[18].mxu1 }
 0x5ab   :  { %v880_v50 = vpack.c.bf16 %v835_v47, %v832_v45  ;;  %v2143_v51 = vpop.f32.mrb[19].mxu1  ;;  %v1900_v47 = vld [vmem:[#allocation6 + $0x8] ss:$0 sm:$0xff] }
 0x5ad   :  { %2186 = vmatprep.mubr.bf16.mxu1 %v880_v50 }
 0x5b0   :  { %v873_v52 = vpop.f32.mrb[20].mxu1 }
 0x5b1   :  { %v2148_v53 = vpop.f32.mrb[21].mxu1 }
 0x5b2   :  { %v876_v54 = vpop.f32.mrb[22].mxu1 }
 0x5b3   :  { %v881_v55 = vpack.c.bf16 %v876_v54, %v873_v52  ;;  %v2149_v56 = vpop.f32.mrb[23].mxu1 }
 0x5b5   :  { %2187 = vmatmul.mubr.bf16.vlgmr.msra.gmra.mrb[24].mxu1 %v881_v55 }
 0x688   :  { %v2188_v2 = vpop.f32.mrb[24].mxu1 }
 0x689   :  { %v1061_v3 = vpop.f32.mrb[25].mxu1  ;;  %v1082_v7 = vadd.f32 %v2188_v2, %v1898_v1 }
 0x68a   :  { %v1080_v4 = vadd.f32 %v1898_v1, %v1061_v3  ;;  %v2189_v5 = vpop.f32.mrb[26].mxu1 }
 0x68b   :  { %v1064_v6 = vpop.f32.mrb[27].mxu1  ;;  %v1083_v10 = vadd.f32 %v2189_v5, %v1898_v1  ;;  %v1086_v13 = vmax.f32 %v1082_v7, 0.0 }
 0x68c   :  { %v1081_v8 = vadd.f32 %v1898_v1, %v1064_v6  ;;  %v1084_v9 = vmax.f32 %v1080_v4, 0.0 }
 0x68d   :  { %v1087_v15 = vmax.f32 %v1083_v10, 0.0 }
 0x68e   :  { %v1085_v12 = vmax.f32 %v1081_v8, 0.0 }
 0x690   :  { %v1088_v14 = vadd.f32 %v1085_v12, %v1084_v9 }
 0x692   :  { %v1089_v16 = vadd.f32 %v1088_v14, %v1086_v13 }
 0x694   :  { %v1090_v17 = vadd.f32 %v1089_v16, %v1087_v15 }
 0x696   :  { %v1091_v18 = vrot.slane %v1090_v17, 4 }
 0x698   :  { %v1092_v19 = vadd.f32 %v1091_v18, %v1090_v17 }
 0x69a   :  { %v1093_v21 = vrot.slane %v1092_v19, 2 }
 0x69c   :  { %v1094_v22 = vadd.f32 %v1093_v21, %v1092_v19 }
 0x69e   :  { %v1095_v23 = vrot.slane %v1094_v22, 1 }
 0x6a0   :  { %v1096_v24 = vadd.f32 %v1095_v23, %v1094_v22 }
 0x6a2   :  { %v1097_v25 = vmul.f32 0.03125, %v1096_v24 }
 0x6a4   :  { %v1098_v26 = vsub.f32 %v1084_v9, %v1097_v25  ;;  %v1099_v27 = vsub.f32 %v1085_v12, %v1097_v25  ;;  %v1100_v28 = vsub.f32 %v1086_v13, %v1097_v25  ;;  %v1101_v20 = vsub.f32 %v1087_v15, %v1097_v25 }
 0x6a6   :  { %v1102_v33 = vmul.f32 %v1098_v26, %v1098_v26  ;;  %v1103_v11 = vmul.f32 %v1099_v27, %v1099_v27  ;;  %v1104_v48 = vmul.f32 %v1100_v28, %v1100_v28  ;;  %v1105_v32 = vmul.f32 %v1101_v20, %v1101_v20 }
 0x6a8   :  { %v1106_v29 = vadd.f32 %v1103_v11, %v1102_v33 }
 0x6aa   :  { %v1107_v30 = vadd.f32 %v1106_v29, %v1104_v48 }
 0x6ac   :  { %v1108_v31 = vadd.f32 %v1107_v30, %v1105_v32 }
 0x6ae   :  { %v1109_v34 = vrot.slane %v1108_v31, 4 }
 0x6b0   :  { %v1110_v35 = vadd.f32 %v1109_v34, %v1108_v31 }
 0x6b2   :  { %v1111_v36 = vrot.slane %v1110_v35, 2 }
 0x6b4   :  { %v1112_v37 = vadd.f32 %v1111_v36, %v1110_v35 }
 0x6b6   :  { %v1113_v38 = vrot.slane %v1112_v37, 1 }
 0x6b8   :  { %v1114_v39 = vadd.f32 %v1113_v38, %v1112_v37 }
 0x6ba   :  { %v1115_v49 = vmul.f32 0.03125, %v1114_v39 }
 0x6bc   :  { %v1116_v40 = vadd.f32 1e-05, %v1115_v49 }
 0x6be   :  { %2375 = vrsqrt.f32 %v1116_v40 }
 0x6c8   :  { %v2376_v41 = vpop.eup %2375 }
 0x6c9   :  { %v1119_v43 = vmul.f32 %v2376_v41, %v1099_v27  ;;  %v1118_v44 = vmul.f32 %v2376_v41, %v1098_v26  ;;  %v1120_v45 = vmul.f32 %v2376_v41, %v1100_v28  ;;  %v1121_v46 = vmul.f32 %v2376_v41, %v1101_v20 }
 0x6cb   :  { %v1127_v50 = vmul.f32 %v1899_v42, %v1119_v43  ;;  %v1126_v51 = vmul.f32 %v1899_v42, %v1118_v44  ;;  %v1128_v52 = vmul.f32 %v1899_v42, %v1120_v45  ;;  %v1129_v53 = vmul.f32 %v1899_v42, %v1121_v46 }
 0x6cd   :  { %v1134_v54 = vadd.f32 %v1900_v47, %v1126_v51  ;;  %v1135_v55 = vadd.f32 %v1900_v47, %v1127_v50  ;;  %v1136_v56 = vadd.f32 %v1900_v47, %v1128_v52  ;;  %v1137_v57 = vadd.f32 %v1900_v47, %v1129_v53  ;;  %v2403_v52 = vld [vmem:[#allocation2 + $0x8] sm:$0xff] }
 0x6cf   :  { %v1138_v58 = vpack.c.bf16 %v1135_v55, %v1134_v54  ;;  %v1139_v59 = vpack.c.bf16 %v1137_v57, %v1136_v56  ;;  %v2404_v55 = vld [vmem:[#allocation2] sm:$0xff] }
 0x6d1   :  { %2246 = vmatprep.mubr.bf16.mxu0 %v1138_v58 }
 0x6d2   :  { %2247 = vmatmul.mubr.bf16.vlgmr.msra.gmra.mrb[12].mxu0 %v1139_v59 }
 0x7a5   :  { %v2248_v61 = vpop.f32.mrb[12].mxu0 }
 0x7a6   :  { %v1466_v62 = vpop.f32.mrb[13].mxu0  ;;  %v1492_v63 = vadd.f32 %v2248_v61, %v1957_v60 }
 0x7a7   :  { %v1490_v0 = vadd.f32 %v1957_v60, %v1466_v62  ;;  %v2249_v1 = vpop.f32.mrb[14].mxu0 }
 0x7a8   :  { %v1469_v2 = vpop.f32.mrb[15].mxu0  ;;  %v1493_v4 = vadd.f32 %v2249_v1, %v1957_v60  ;;  %v1496_v6 = vmax.f32 %v1492_v63, 0.0 }
 0x7a9   :  { %v1494_v3 = vmax.f32 %v1490_v0, 0.0  ;;  %v1491_v5 = vadd.f32 %v1957_v60, %v1469_v2  ;;  %v2405_v0 = vld [vmem:[#allocation2 + $0x18] sm:$0xff] }
 0x7aa   :  { %v1497_v9 = vmax.f32 %v1493_v4, 0.0  ;;  %v1505_v12 = vsel %vm1498_vm4, %v1496_v6, -inf }
 0x7ab   :  { %v1495_v7 = vmax.f32 %v1491_v5, 0.0  ;;  %v1499_v8 = vsel %vm1498_vm4, %v1494_v3, -inf  ;;  %v2406_v5 = vld [vmem:[#allocation2 + $0x10] sm:$0xff] }
 0x7ac   :  { %1500 = vmax.xlane.f32.xlu0 %v1499_v8  ;;  %v1508_v13 = vsel %vm1498_vm4, %v1497_v9, -inf }
 0x7ad   :  { %v1502_v10 = vsel %vm1498_vm4, %v1495_v7, -inf }
 0x7ae   :  { %1503 = vmax.xlane.f32.xlu1 %v1502_v10 }
 0x7b0   :  { %1506 = vmax.xlane.f32.xlu0 %v1505_v12 }
 0x7b2   :  { %1509 = vmax.xlane.f32.xlu1 %v1508_v13 }
 0x839   :  { %v1501_v14 = vpop.xlane.xlu0 %1500 }
 0x83a   :  { %v1511_v15 = vsub.f32 %v1494_v3, %v1501_v14 }
 0x83b   :  { %v1504_v16 = vpop.xlane.xlu1 %1503 }
 0x83c   :  { %v1515_v17 = vmul.f32 1.442695, %v1511_v15  ;;  %v1512_v18 = vsub.f32 %v1495_v7, %v1504_v16 }
 0x83d   :  { %v1507_v19 = vpop.xlane.xlu0 %1506 }
 0x83e   :  { %2377 = vpow2.f32 %v1515_v17  ;;  %v1517_v21 = vmul.f32 1.442695, %v1512_v18  ;;  %v1513_v22 = vsub.f32 %v1496_v6, %v1507_v19 }
 0x83f   :  { %v1510_v23 = vpop.xlane.xlu1 %1509 }
 0x840   :  { %2379 = vpow2.f32 %v1517_v21  ;;  %v1519_v24 = vmul.f32 1.442695, %v1513_v22  ;;  %v1514_v25 = vsub.f32 %v1497_v9, %v1510_v23 }
 0x842   :  { %2381 = vpow2.f32 %v1519_v24  ;;  %v1521_v26 = vmul.f32 1.442695, %v1514_v25 }
 0x844   :  { %2383 = vpow2.f32 %v1521_v26 }
 0x848   :  { %v2378_v27 = vpop.eup %2377 }
 0x849   :  { %v1523_v28 = vsel %vm1498_vm4, %v2378_v27, 0.0 }
 0x84a   :  { %v2380_v20 = vpop.eup %2379  ;;  %1524 = vadd.xlane.f32.xlu0 %v1523_v28 }
 0x84b   :  { %v1526_v33 = vsel %vm1498_vm4, %v2380_v20, 0.0 }
 0x84c   :  { %v2382_v11 = vpop.eup %2381  ;;  %1527 = vadd.xlane.f32.xlu1 %v1526_v33 }
 0x84d   :  { %v1529_v48 = vsel %vm1498_vm4, %v2382_v11, 0.0 }
 0x84e   :  { %v2384_v29 = vpop.eup %2383  ;;  %1530 = vadd.xlane.f32.xlu0 %v1529_v48 }
 0x84f   :  { %v1532_v32 = vsel %vm1498_vm4, %v2384_v29, 0.0 }
 0x850   :  { %1533 = vadd.xlane.f32.xlu1 %v1532_v32 }
 0x8d7   :  { %v1525_v30 = vpop.xlane.xlu0 %1524 }
 0x8d8   :  { %2385 = vrcp.f32 %v1525_v30 }
 0x8d9   :  { %v1528_v31 = vpop.xlane.xlu1 %1527 }
 0x8da   :  { %2387 = vrcp.f32 %v1528_v31 }
 0x8db   :  { %v1531_v34 = vpop.xlane.xlu0 %1530 }
 0x8dc   :  { %2389 = vrcp.f32 %v1531_v34 }
 0x8dd   :  { %v1534_v35 = vpop.xlane.xlu1 %1533 }
 0x8de   :  { %2391 = vrcp.f32 %v1534_v35 }
 0x8e2   :  { %v2386_v36 = vpop.eup %2385 }
 0x8e3   :  { %v2810_v37 = vmul.f32 %v2386_v36, %v2378_v27 }
 0x8e4   :  { %v2388_v38 = vpop.eup %2387 }
 0x8e5   :  { %1543 = vst.msk [vmem:[%s2866_s6] sm:$0xff] %vm1498_vm4, %v2810_v37  ;;  %v1540_v39 = vmul.f32 %v2388_v38, %v2380_v20  ;;  %2254 = vmatprep.mubr.msk.f32.mxu1 %vm1498_vm4, %v2810_v37  ;;  %v1752_v46 = vadd.f32 1e-15, %v2810_v37  ;;  %v1748_v13 = vsub.f32 0.0, %v2810_v37 }
 0x8e6   :  { %v2390_v49 = vpop.eup %2389 }
 0x8e7   :  { %1544 = vst.msk [vmem:[%s2866_s6 + $0x8] sm:$0xff] %vm1498_vm4, %v1540_v39  ;;  %v2825_v40 = vmul.f32 %v2390_v49, %v2382_v11  ;;  %v2264_v41 = vpack.c.bf16 %v1540_v39, %v2810_v37  ;;  %v1753_v45 = vadd.f32 1e-15, %v1540_v39  ;;  %v1749_v10 = vsub.f32 0.0, %v1540_v39 }
 0x8e8   :  { %v2392_v42 = vpop.eup %2391 }
 0x8e9   :  { %1545 = vst.msk [vmem:[%s2866_s6 + $0x10] sm:$0xff] %vm1498_vm4, %v2825_v40  ;;  %v1542_v43 = vmul.f32 %v2392_v42, %v2384_v29  ;;  %2266 = vmatprep.subr.msk.bf16.mxu1 %vm2265_vm5, %v2264_v41  ;;  %2393 = vlog2.f32 %v1753_v45  ;;  %v1754_v50 = vadd.f32 1e-15, %v2825_v40  ;;  %v1750_v22 = vsub.f32 0.0, %v2825_v40 }
 0x8ea   :  { %2269 = vmatpush3.bf16.xpose.msk.msra.mxu1 %vm2265_vm5, %v2264_v41  ;;  %2395 = vlog2.f32 %v1752_v46 }
 0x8eb   :  { %1546 = vst.msk [vmem:[%s2866_s6 + $0x18] sm:$0xff] %vm1498_vm4, %v1542_v43  ;;  %v2270_v44 = vpack.c.bf16 %v1542_v43, %v2825_v40  ;;  %v1755_v47 = vadd.f32 1e-15, %v1542_v43  ;;  %v1751_v21 = vsub.f32 0.0, %v1542_v43 }
 0x8ed   :  { %2272 = vmatprep.subr.msk.bf16.mxu1 %vm2265_vm5, %v2270_v44  ;;  %2397 = vlog2.f32 %v1755_v47 }
 0x8ee   :  { %2399 = vlog2.f32 %v1754_v50 }
 0x8f1   :  { %2255 = vmatmul.mubr.msk.f32.vlgmr.msra.gmra.mrb[28].mxu1 %vm1498_vm4, %v1540_v39 }
 0x8f2   :  { %2275 = vmatpush3.bf16.xpose.msk.msra.mxu1 %vm2265_vm5, %v2270_v44  ;;  %2261 = vmatprep.mubr.msk.f32.mxu1 %vm1498_vm4, %v2825_v40 }
 0x8f3   :  { %v2394_v60 = vpop.eup %2393 }
 0x8f4   :  { %v2396_v62 = vpop.eup %2395  ;;  %v1759_v3 = vmul.f32 0.6931472, %v2394_v60 }
 0x8f5   :  { %v1757_v7 = vmul.f32 0.6931472, %v2396_v62 }
 0x8f6   :  { %v1765_v15 = vmul.f32 %v1759_v3, %v1749_v10 }
 0x8f7   :  { %v2398_v4 = vpop.eup %2397  ;;  %v1764_v18 = vmul.f32 %v1757_v7, %v1748_v13 }
 0x8f8   :  { %v2400_v8 = vpop.eup %2399  ;;  %v1763_v16 = vmul.f32 0.6931472, %v2398_v4  ;;  %v1771_v23 = vsel %vm1498_vm4, %v1765_v15, 0.0 }
 0x8f9   :  { %2262 = vmatmul.mubr.msk.f32.vlgmr.msra.gmra.mrb[30].mxu1 %vm1498_vm4, %v1542_v43  ;;  %v1761_v19 = vmul.f32 0.6931472, %v2400_v8  ;;  %v1768_v25 = vsel %vm1498_vm4, %v1764_v18, 0.0 }
 0x8fa   :  { %v1767_v24 = vmul.f32 %v1763_v16, %v1751_v21 }
 0x8fb   :  { %v1766_v26 = vmul.f32 %v1761_v19, %v1750_v22 }
 0x8fc   :  { %v1777_v27 = vsel %vm1498_vm4, %v1767_v24, 0.0 }
 0x8fd   :  { %v1774_v28 = vsel %vm1498_vm4, %v1766_v26, 0.0 }
 0x9c4   :  { %v2256_v51 = vpop.f32.mrb[28].mxu1 }
 0x9c5   :  { %v1710_v53 = vsub.f32 %v2403_v52, %v2256_v51  ;;  %v1619_v54 = vpop.f32.mrb[29].mxu1 }
 0x9c6   :  { %v1709_v56 = vsub.f32 %v2404_v55, %v1619_v54 }
 0x9c7   :  { %v1714_v57 = vmul.f32 %v1710_v53, %v1710_v53 }
 0x9c8   :  { %v1713_v58 = vmul.f32 %v1709_v56, %v1709_v56 }
 0x9c9   :  { %v1720_v59 = vsel %vm71_vm0, %v1714_v57, 0.0 }
 0x9ca   :  { %1721 = vadd.xlane.f32.xlu1 %v1720_v59  ;;  %v1717_v61 = vsel %vm71_vm0, %v1713_v58, 0.0 }
 0x9cb   :  { %1718 = vadd.xlane.f32.xlu0 %v1717_v61 }
 0x9cc   :  { %v2263_v63 = vpop.f32.mrb[30].mxu1 }
 0x9cd   :  { %v1712_v1 = vsub.f32 %v2405_v0, %v2263_v63  ;;  %v1700_v2 = vpop.f32.mrb[31].mxu1 }
 0x9ce   :  { %v1711_v6 = vsub.f32 %v2406_v5, %v1700_v2 }
 0x9cf   :  { %v1716_v9 = vmul.f32 %v1712_v1, %v1712_v1 }
 0x9d0   :  { %v1715_v12 = vmul.f32 %v1711_v6, %v1711_v6 }
 0x9d1   :  { %v1726_v14 = vsel %vm71_vm0, %v1716_v9, 0.0 }
 0x9d2   :  { %1727 = vadd.xlane.f32.xlu1 %v1726_v14  ;;  %v1723_v17 = vsel %vm71_vm0, %v1715_v12, 0.0 }
 0x9d3   :  { %1724 = vadd.xlane.f32.xlu0 %v1723_v17 }
 0x9d6   :  { %1772 = vadd.xlane.f32.xlu1 %v1771_v23 }
 0x9d7   :  { %1769 = vadd.xlane.f32.xlu0 %v1768_v25 }
 0x9da   :  { %1778 = vadd.xlane.f32.xlu1 %v1777_v27 }
 0x9db   :  { %1775 = vadd.xlane.f32.xlu0 %v1774_v28 }
 0xa57   :  { %v1722_v20 = vpop.xlane.xlu1 %1721 }
 0xa58   :  { %v1719_v33 = vpop.xlane.xlu0 %1718 }
 0xa59   :  { %v1729_v11 = vadd.f32 %v1722_v20, %v1719_v33 }
 0xa5f   :  { %v1728_v48 = vpop.xlane.xlu1 %1727 }
 0xa60   :  { %v1725_v29 = vpop.xlane.xlu0 %1724 }
 0xa61   :  { %v1730_v32 = vadd.f32 %v1729_v11, %v1725_v29 }
 0xa63   :  { %v1731_v30 = vadd.f32 %v1730_v32, %v1728_v48  ;;  %v1773_v31 = vpop.xlane.xlu1 %1772 }
 0xa64   :  { %v1770_v34 = vpop.xlane.xlu0 %1769 }
 0xa65   :  { %v1732_v35 = vrot.slane %v1731_v30, 4  ;;  %v1780_v37 = vadd.f32 %v1773_v31, %v1770_v34 }
 0xa67   :  { %v1733_v36 = vadd.f32 %v1732_v35, %v1731_v30  ;;  %v1779_v40 = vpop.xlane.xlu1 %1778 }
 0xa68   :  { %v1776_v38 = vpop.xlane.xlu0 %1775 }
 0xa69   :  { %v1734_v39 = vrot.slane %v1733_v36, 2  ;;  %v1781_v49 = vadd.f32 %v1780_v37, %v1776_v38 }
 0xa6b   :  { %v1735_v41 = vadd.f32 %v1734_v39, %v1733_v36  ;;  %v1782_v42 = vadd.f32 %v1781_v49, %v1779_v40 }
 0xa6d   :  { %v1736_v43 = vrot.slane %v1735_v41, 1  ;;  %v1783_v44 = vrot.slane %v1782_v42, 4 }
 0xa6f   :  { %v1737_v45 = vadd.f32 %v1736_v43, %v1735_v41  ;;  %v1784_v46 = vadd.f32 %v1783_v44, %v1782_v42 }
 0xa71   :  { %2401 = vrsqrt.f32 %v1737_v45  ;;  %v1785_v47 = vrot.slane %v1784_v46, 2  ;;  %vm1740_vm6 = vcmp.eq.f32.partialorder %v1737_v45, inf  ;;  %v1743_v54 = vand.u32 2147483648, %v1737_v45 }
 0xa72   :  { %vm1742_vm7 = vcmp.eq.f32.partialorder %v1737_v45, 0.0 }
 0xa73   :  { %v1786_v50 = vadd.f32 %v1785_v47, %v1784_v46 }
 0xa75   :  { %v1787_v51 = vrot.slane %v1786_v50, 1 }
 0xa77   :  { %v1788_v55 = vadd.f32 %v1787_v51, %v1786_v50 }
 0xa79   :  { %v1789_v59 = vmul.f32 0.03125, %v1788_v55 }
 0xa7b   :  { %v2402_v52 = vpop.eup %2401 }
 0xa7c   :  { %v1739_v53 = vmul.f32 %v2402_v52, %v1737_v45 }
 0xa7e   :  { %v1741_v56 = vsel %vm1740_vm6, %v1737_v45, %v1739_v53 }
 0xa7f   :  { %v1744_v57 = vsel %vm1742_vm7, %v1743_v54, %v1741_v56 }
 0xa80   :  { %v1745_v58 = vmul.f32 0.001953125, %v1744_v57 }
 0xa82   :  { %1747 = vst.msk [vmem:[%s2867_s7] sm:$0x1] %vm1746_vm8, %v1745_v58 }
 0xa83   :  { %1791 = vst.msk [vmem:[%s2867_s7] sm:$0x1] %vm1790_vm9, %v1789_v59 }
 0xa84   :  { %1800 = vsyncpa [#allocation3], 1 }
 0xa85   :  { %1801 = vsyncpa [#allocation5], 1 }

</bundles_post_ra>
